<compile_context>
chip_gen: v6e
topology: v6e:2x2x1
jax: 0.10.0
libtpu: 0.0.40
codegen_flags: <defaults>
</compile_context>

<pallas_src>
import functools

import jax
import jax.numpy as jnp
from jax import lax
from jax.experimental import pallas as pl
from jax.experimental.pallas import tpu as pltpu

LN_EPS = 1e-6       # custom LayerNorm eps in the module
N_HEADS = 4


def _matmul_tn(a, w):
    """a: (M, K) contracted against torch-layout w: (N, K) -> (M, N), f32 acc."""
    return lax.dot_general(a, w, (((1,), (1,)), ((), ())),
                           preferred_element_type=jnp.float32)


def _layernorm(x, gamma, beta, n):
    # Matches the module: unbiased std (divisor n-1), eps added to std.
    mean = jnp.mean(x, axis=-1, keepdims=True)
    c = x - mean
    var = jnp.sum(c * c, axis=-1, keepdims=True) / (n - 1)
    return gamma * c / (jnp.sqrt(var) + LN_EPS) + beta


def _erf(x):
    # Abramowitz & Stegun 7.1.26 polynomial (max abs err ~1.5e-7); keeps the
    # erf-based (exact) GELU semantics of nn.GELU() while lowering to exp/VPU.
    p = 0.3275911
    a1, a2, a3, a4, a5 = (0.254829592, -0.284496736, 1.421413741,
                          -1.453152027, 1.061405429)
    s = jnp.where(x >= 0.0, 1.0, -1.0)
    ax = jnp.abs(x)
    t = 1.0 / (1.0 + p * ax)
    poly = ((((a5 * t + a4) * t + a3) * t + a2) * t + a1) * t
    return s * (1.0 - poly * jnp.exp(-ax * ax))


def _gelu(x):
    return 0.5 * x * (1.0 + _erf(x * 0.7071067811865475))


def _encoder_layer_kernel(x_ref,
                          g1_ref, be1_ref,
                          wq_ref, bq_ref, wk_ref, bk_ref, wv_ref, bv_ref,
                          wo_ref, bo_ref,
                          g2_ref, be2_ref,
                          w1_ref, b1_ref, w2_ref, b2_ref,
                          o_ref, *, n_heads, d_head):
    S, E = x_ref.shape
    x = x_ref[...].astype(jnp.float32)                       # (S, E)

    # ---------- sublayer 0: x + SelfAttention(LayerNorm(x)) ----------
    xn = _layernorm(x,
                    g1_ref[...].astype(jnp.float32),
                    be1_ref[...].astype(jnp.float32), E)

    scale = 1.0 / (float(d_head) ** 0.5)
    attn = jnp.zeros((S, E), jnp.float32)
    for h in range(n_heads):                                  # static unroll
        qh = _matmul_tn(xn, wq_ref[h].astype(jnp.float32)) \
            + bq_ref[h].astype(jnp.float32)                   # (S, Dh)
        kh = _matmul_tn(xn, wk_ref[h].astype(jnp.float32)) \
            + bk_ref[h].astype(jnp.float32)
        vh = _matmul_tn(xn, wv_ref[h].astype(jnp.float32)) \
            + bv_ref[h].astype(jnp.float32)

        s = _matmul_tn(qh, kh) * scale                        # (S, S)
        s = s - jnp.max(s, axis=-1, keepdims=True)
        p = jnp.exp(s)
        p = p / jnp.sum(p, axis=-1, keepdims=True)

        oh = jnp.dot(p, vh, preferred_element_type=jnp.float32)   # (S, Dh)
        attn = attn + jnp.dot(oh, wo_ref[h].astype(jnp.float32),
                              preferred_element_type=jnp.float32)  # (S, E)

    x = x + attn + bo_ref[...].astype(jnp.float32)

    # ---------- sublayer 1: x + MLP(LayerNorm(x)) ----------
    xn2 = _layernorm(x,
                     g2_ref[...].astype(jnp.float32),
                     be2_ref[...].astype(jnp.float32), E)
    hid = _matmul_tn(xn2, w1_ref[...].astype(jnp.float32)) \
        + b1_ref[...].astype(jnp.float32)                     # (S, 4E)
    hid = _gelu(hid)
    y = _matmul_tn(hid, w2_ref[...].astype(jnp.float32)) \
        + b2_ref[...].astype(jnp.float32)                     # (S, E)

    o_ref[...] = (x + y).astype(o_ref.dtype)


def encoder_layer(x, params, *, n_heads=N_HEADS):
    """x: (B, S, E); params: torch-layout weights (see main)."""
    (g1, be1, wq, bq, wk, bk, wv, bv, wo, bo,
     g2, be2, w1, b1, w2, b2) = params
    B, S, E = x.shape
    assert E % n_heads == 0
    H, Dh = n_heads, E // n_heads
    hidden = w1.shape[0]

    # One-time tiny weight-layout prep (weights only, no activation work):
    # per-head (H, Dh, E) layout keeps the kernel lane-dense along E and
    # avoids any in-kernel activation reshape/transpose.
    wq_r = wq.reshape(H, Dh, E)
    wk_r = wk.reshape(H, Dh, E)
    wv_r = wv.reshape(H, Dh, E)
    bq_r = bq.reshape(H, 1, Dh)
    bk_r = bk.reshape(H, 1, Dh)
    bv_r = bv.reshape(H, 1, Dh)
    wo_r = wo.T.reshape(H, Dh, E)        # wo_r[h, d, e] = Wo[e, h*Dh + d]
    bo_r = bo.reshape(1, E)
    g1_r, be1_r = g1.reshape(1, E), be1.reshape(1, E)
    g2_r, be2_r = g2.reshape(1, E), be2.reshape(1, E)
    b1_r = b1.reshape(1, hidden)
    b2_r = b2.reshape(1, E)

    def res2(shape):        # VMEM-resident 2-D param (constant index map)
        return pl.BlockSpec(shape, lambda b: (0, 0))

    def res3(shape):        # VMEM-resident 3-D param
        return pl.BlockSpec(shape, lambda b: (0, 0, 0))

    kernel = functools.partial(_encoder_layer_kernel,
                               n_heads=H, d_head=Dh)

    out = pl.pallas_call(
        kernel,
        out_shape=jax.ShapeDtypeStruct((B, S, E), x.dtype),
        grid=(B,),
        in_specs=[
            pl.BlockSpec((pl.Squeezed(), S, E), lambda b: (b, 0, 0)),  # x
            res2((1, E)), res2((1, E)),                                # LN1 g/b
            res3((H, Dh, E)), res3((H, 1, Dh)),                        # Wq, bq
            res3((H, Dh, E)), res3((H, 1, Dh)),                        # Wk, bk
            res3((H, Dh, E)), res3((H, 1, Dh)),                        # Wv, bv
            res3((H, Dh, E)), res2((1, E)),                            # Wo, bo
            res2((1, E)), res2((1, E)),                                # LN2 g/b
            res2((hidden, E)), res2((1, hidden)),                      # W1, b1
            res2((E, hidden)), res2((1, E)),                           # W2, b2
        ],
        out_specs=pl.BlockSpec((pl.Squeezed(), S, E), lambda b: (b, 0, 0)),
        compiler_params=pltpu.CompilerParams(
            dimension_semantics=("parallel",)),
    )(x, g1_r, be1_r, wq_r, bq_r, wk_r, bk_r, wv_r, bv_r, wo_r, bo_r,
      g2_r, be2_r, w1, b1_r, w2, b2_r)
    return out


def _reference(x, params, n_heads=N_HEADS):
    """Pure-JAX reference with the module's exact semantics."""
    (g1, be1, wq, bq, wk, bk, wv, bv, wo, bo,
     g2, be2, w1, b1, w2, b2) = params
    B, S, E = x.shape
    Dh = E // n_heads
    hp = "highest"

    def ln(v, g, b):
        mean = jnp.mean(v, axis=-1, keepdims=True)
        std = jnp.std(v, axis=-1, keepdims=True, ddof=1)
        return g * (v - mean) / (std + LN_EPS) + b

    # --- attention sublayer ---
    xn = ln(x, g1, be1)
    q = jnp.einsum("bse,oe->bso", xn, wq, precision=hp) + bq
    k = jnp.einsum("bse,oe->bso", xn, wk, precision=hp) + bk
    v = jnp.einsum("bse,oe->bso", xn, wv, precision=hp) + bv

    def split(t):
        return t.reshape(B, S, n_heads, Dh).transpose(0, 2, 1, 3)

    qh, kh, vh = split(q), split(k), split(v)
    s = jnp.einsum("bhqd,bhkd->bhqk", qh, kh, precision=hp) / jnp.sqrt(
        jnp.float32(Dh))
    p = jax.nn.softmax(s, axis=-1)
    o = jnp.einsum("bhqk,bhkd->bhqd", p, vh, precision=hp)
    o = o.transpose(0, 2, 1, 3).reshape(B, S, E)
    x = x + (jnp.einsum("bse,oe->bso", o, wo, precision=hp) + bo)

    # --- MLP sublayer (exact erf GELU) ---
    xn2 = ln(x, g2, be2)
    h = jnp.einsum("bse,he->bsh", xn2, w1, precision=hp) + b1
    h = 0.5 * h * (1.0 + jax.scipy.special.erf(h / jnp.sqrt(jnp.float32(2.0))))
    y = jnp.einsum("bsh,eh->bse", h, w2, precision=hp) + b2
    return x + y


if __name__ == "__main__":
    # Small shapes consistent with the encoder layer:
    # batch=2, seq=8, emb=32, heads=4, mlp hidden = 4*32 = 128
    B, S, E = 2, 8, 32
    H = N_HEADS
    hidden = 4 * E

    key = jax.random.PRNGKey(0)
    ks = jax.random.split(key, 17)

    def rnd(k, shape, scale):
        return scale * jax.random.normal(k, shape, dtype=jnp.float32)

    x = jax.random.normal(ks[0], (B, S, E), dtype=jnp.float32)
    g1 = 1.0 + 0.02 * jax.random.normal(ks[1], (E,), dtype=jnp.float32)
    be1 = 0.02 * jax.random.normal(ks[2], (E,), dtype=jnp.float32)
    wq = rnd(ks[3], (E, E), E ** -0.5);   bq = rnd(ks[4], (E,), 0.02)
    wk = rnd(ks[5], (E, E), E ** -0.5);   bk = rnd(ks[6], (E,), 0.02)
    wv = rnd(ks[7], (E, E), E ** -0.5);   bv = rnd(ks[8], (E,), 0.02)
    wo = rnd(ks[9], (E, E), E ** -0.5);   bo = rnd(ks[10], (E,), 0.02)
    g2 = 1.0 + 0.02 * jax.random.normal(ks[11], (E,), dtype=jnp.float32)
    be2 = 0.02 * jax.random.normal(ks[12], (E,), dtype=jnp.float32)
    w1 = rnd(ks[13], (hidden, E), E ** -0.5);       b1 = rnd(ks[14], (hidden,), 0.02)
    w2 = rnd(ks[15], (E, hidden), hidden ** -0.5);  b2 = rnd(ks[16], (E,), 0.02)

    params = (g1, be1, wq, bq, wk, bk, wv, bv, wo, bo,
              g2, be2, w1, b1, w2, b2)

    out = encoder_layer(x, params)
    out = jax.block_until_ready(out)

    ref = _reference(x, params)
    assert out.shape == (B, S, E), out.shape
    max_err = float(jnp.max(jnp.abs(out - ref)))
    assert jnp.allclose(out, ref, atol=1e-3, rtol=1e-3), max_err

    print("KERNEL_OK")
</pallas_src>

<mosaic_0001>
module attributes {stable_mosaic.version = 11 : i64} {
  func.func @_encoder_layer_kernel(%arg0: i32, %arg1: memref<1x8x32xf32, #tpu.memory_space<vmem>>, %arg2: memref<1x32xf32, #tpu.memory_space<vmem>>, %arg3: memref<1x32xf32, #tpu.memory_space<vmem>>, %arg4: memref<4x8x32xf32, #tpu.memory_space<vmem>>, %arg5: memref<4x1x8xf32, #tpu.memory_space<vmem>>, %arg6: memref<4x8x32xf32, #tpu.memory_space<vmem>>, %arg7: memref<4x1x8xf32, #tpu.memory_space<vmem>>, %arg8: memref<4x8x32xf32, #tpu.memory_space<vmem>>, %arg9: memref<4x1x8xf32, #tpu.memory_space<vmem>>, %arg10: memref<4x8x32xf32, #tpu.memory_space<vmem>>, %arg11: memref<1x32xf32, #tpu.memory_space<vmem>>, %arg12: memref<1x32xf32, #tpu.memory_space<vmem>>, %arg13: memref<1x32xf32, #tpu.memory_space<vmem>>, %arg14: memref<128x32xf32, #tpu.memory_space<vmem>>, %arg15: memref<1x128xf32, #tpu.memory_space<vmem>>, %arg16: memref<32x128xf32, #tpu.memory_space<vmem>>, %arg17: memref<1x32xf32, #tpu.memory_space<vmem>>, %arg18: memref<1x8x32xf32, #tpu.memory_space<vmem>>) attributes {dimension_semantics = [#tpu.dimension_semantics<parallel>], iteration_bounds = array<i64: 2>, scalar_prefetch = 0 : i64, scratch_operands = 0 : i64, tpu.core_type = #tpu.core_type<tc>, window_params = [{transform_indices = @transform_0, window_bounds = array<i64: 1, 8, 32>}, {pipeline_mode = #tpu.pipeline_mode<synchronous>, transform_indices = @transform_1, window_bounds = array<i64: 1, 32>}, {pipeline_mode = #tpu.pipeline_mode<synchronous>, transform_indices = @transform_2, window_bounds = array<i64: 1, 32>}, {pipeline_mode = #tpu.pipeline_mode<synchronous>, transform_indices = @transform_3, window_bounds = array<i64: 4, 8, 32>}, {pipeline_mode = #tpu.pipeline_mode<synchronous>, transform_indices = @transform_4, window_bounds = array<i64: 4, 1, 8>}, {pipeline_mode = #tpu.pipeline_mode<synchronous>, transform_indices = @transform_5, window_bounds = array<i64: 4, 8, 32>}, {pipeline_mode = #tpu.pipeline_mode<synchronous>, transform_indices = @transform_6, window_bounds = array<i64: 4, 1, 8>}, {pipeline_mode = #tpu.pipeline_mode<synchronous>, transform_indices = @transform_7, window_bounds = array<i64: 4, 8, 32>}, {pipeline_mode = #tpu.pipeline_mode<synchronous>, transform_indices = @transform_8, window_bounds = array<i64: 4, 1, 8>}, {pipeline_mode = #tpu.pipeline_mode<synchronous>, transform_indices = @transform_9, window_bounds = array<i64: 4, 8, 32>}, {pipeline_mode = #tpu.pipeline_mode<synchronous>, transform_indices = @transform_10, window_bounds = array<i64: 1, 32>}, {pipeline_mode = #tpu.pipeline_mode<synchronous>, transform_indices = @transform_11, window_bounds = array<i64: 1, 32>}, {pipeline_mode = #tpu.pipeline_mode<synchronous>, transform_indices = @transform_12, window_bounds = array<i64: 1, 32>}, {pipeline_mode = #tpu.pipeline_mode<synchronous>, transform_indices = @transform_13, window_bounds = array<i64: 128, 32>}, {pipeline_mode = #tpu.pipeline_mode<synchronous>, transform_indices = @transform_14, window_bounds = array<i64: 1, 128>}, {pipeline_mode = #tpu.pipeline_mode<synchronous>, transform_indices = @transform_15, window_bounds = array<i64: 32, 128>}, {pipeline_mode = #tpu.pipeline_mode<synchronous>, transform_indices = @transform_16, window_bounds = array<i64: 1, 32>}, {transform_indices = @transform_17, window_bounds = array<i64: 1, 8, 32>}]} {
    %c0 = arith.constant 0 : index
    %c0_0 = arith.constant 0 : index
    %c0_1 = arith.constant 0 : index
    %0 = vector.load %arg1[%c0, %c0_0, %c0_1] : memref<1x8x32xf32, #tpu.memory_space<vmem>>, vector<1x8x32xf32>
    %1 = vector.shape_cast %0 : vector<1x8x32xf32> to vector<8x32xf32>
    %c0_2 = arith.constant 0 : index
    %c0_3 = arith.constant 0 : index
    %2 = vector.load %arg2[%c0_2, %c0_3] : memref<1x32xf32, #tpu.memory_space<vmem>>, vector<1x32xf32>
    %c0_4 = arith.constant 0 : index
    %c0_5 = arith.constant 0 : index
    %3 = vector.load %arg3[%c0_4, %c0_5] : memref<1x32xf32, #tpu.memory_space<vmem>>, vector<1x32xf32>
    %cst = arith.constant dense<0.000000e+00> : vector<8xf32>
    %4 = vector.multi_reduction <add>, %1, %cst [1] : vector<8x32xf32> to vector<8xf32>
    %5 = vector.shape_cast %4 : vector<8xf32> to vector<8x1xf32>
    %cst_6 = arith.constant 3.200000e+01 : f32
    %6 = vector.broadcast %cst_6 : f32 to vector<8x1xf32>
    %7 = arith.divf %5, %6 : vector<8x1xf32>
    %8 = vector.broadcast %7 : vector<8x1xf32> to vector<8x32xf32>
    %9 = arith.subf %1, %8 : vector<8x32xf32>
    %10 = arith.mulf %9, %9 : vector<8x32xf32>
    %cst_7 = arith.constant dense<0.000000e+00> : vector<8xf32>
    %11 = vector.multi_reduction <add>, %10, %cst_7 [1] : vector<8x32xf32> to vector<8xf32>
    %12 = vector.shape_cast %11 : vector<8xf32> to vector<8x1xf32>
    %cst_8 = arith.constant 3.100000e+01 : f32
    %13 = vector.broadcast %cst_8 : f32 to vector<8x1xf32>
    %14 = arith.divf %12, %13 : vector<8x1xf32>
    %15 = vector.broadcast %2 : vector<1x32xf32> to vector<8x32xf32>
    %16 = arith.mulf %15, %9 : vector<8x32xf32>
    %17 = math.sqrt %14 : vector<8x1xf32>
    %cst_9 = arith.constant 9.99999997E-7 : f32
    %18 = vector.broadcast %cst_9 : f32 to vector<8x1xf32>
    %19 = arith.addf %17, %18 : vector<8x1xf32>
    %20 = vector.broadcast %19 : vector<8x1xf32> to vector<8x32xf32>
    %21 = arith.divf %16, %20 : vector<8x32xf32>
    %22 = vector.broadcast %3 : vector<1x32xf32> to vector<8x32xf32>
    %23 = arith.addf %21, %22 : vector<8x32xf32>
    %cst_10 = arith.constant 0.000000e+00 : f32
    %24 = vector.broadcast %cst_10 : f32 to vector<8x32xf32>
    %c0_11 = arith.constant 0 : index
    %c0_12 = arith.constant 0 : index
    %c0_13 = arith.constant 0 : index
    %25 = vector.load %arg4[%c0_11, %c0_12, %c0_13] : memref<4x8x32xf32, #tpu.memory_space<vmem>>, vector<1x8x32xf32>
    %26 = vector.shape_cast %25 : vector<1x8x32xf32> to vector<8x32xf32>
    %cst_14 = arith.constant dense<0.000000e+00> : vector<8x8xf32>
    %27 = tpu.matmul %23, %26, %cst_14 {dimension_numbers = #tpu.dot_dimension_numbers<[1], [1], [0], [0], [0, 0, 1, 0], [], []>} : vector<8x32xf32>, vector<8x32xf32>, vector<8x8xf32> -> vector<8x8xf32>
    %c0_15 = arith.constant 0 : index
    %c0_16 = arith.constant 0 : index
    %c0_17 = arith.constant 0 : index
    %28 = vector.load %arg5[%c0_15, %c0_16, %c0_17] : memref<4x1x8xf32, #tpu.memory_space<vmem>>, vector<1x1x8xf32>
    %29 = vector.shape_cast %28 : vector<1x1x8xf32> to vector<1x8xf32>
    %30 = vector.broadcast %29 : vector<1x8xf32> to vector<8x8xf32>
    %31 = arith.addf %27, %30 : vector<8x8xf32>
    %c0_18 = arith.constant 0 : index
    %c0_19 = arith.constant 0 : index
    %c0_20 = arith.constant 0 : index
    %32 = vector.load %arg6[%c0_18, %c0_19, %c0_20] : memref<4x8x32xf32, #tpu.memory_space<vmem>>, vector<1x8x32xf32>
    %33 = vector.shape_cast %32 : vector<1x8x32xf32> to vector<8x32xf32>
    %cst_21 = arith.constant dense<0.000000e+00> : vector<8x8xf32>
    %34 = tpu.matmul %23, %33, %cst_21 {dimension_numbers = #tpu.dot_dimension_numbers<[1], [1], [0], [0], [0, 0, 1, 0], [], []>} : vector<8x32xf32>, vector<8x32xf32>, vector<8x8xf32> -> vector<8x8xf32>
    %c0_22 = arith.constant 0 : index
    %c0_23 = arith.constant 0 : index
    %c0_24 = arith.constant 0 : index
    %35 = vector.load %arg7[%c0_22, %c0_23, %c0_24] : memref<4x1x8xf32, #tpu.memory_space<vmem>>, vector<1x1x8xf32>
    %36 = vector.shape_cast %35 : vector<1x1x8xf32> to vector<1x8xf32>
    %37 = vector.broadcast %36 : vector<1x8xf32> to vector<8x8xf32>
    %38 = arith.addf %34, %37 : vector<8x8xf32>
    %c0_25 = arith.constant 0 : index
    %c0_26 = arith.constant 0 : index
    %c0_27 = arith.constant 0 : index
    %39 = vector.load %arg8[%c0_25, %c0_26, %c0_27] : memref<4x8x32xf32, #tpu.memory_space<vmem>>, vector<1x8x32xf32>
    %40 = vector.shape_cast %39 : vector<1x8x32xf32> to vector<8x32xf32>
    %cst_28 = arith.constant dense<0.000000e+00> : vector<8x8xf32>
    %41 = tpu.matmul %23, %40, %cst_28 {dimension_numbers = #tpu.dot_dimension_numbers<[1], [1], [0], [0], [0, 0, 1, 0], [], []>} : vector<8x32xf32>, vector<8x32xf32>, vector<8x8xf32> -> vector<8x8xf32>
    %c0_29 = arith.constant 0 : index
    %c0_30 = arith.constant 0 : index
    %c0_31 = arith.constant 0 : index
    %42 = vector.load %arg9[%c0_29, %c0_30, %c0_31] : memref<4x1x8xf32, #tpu.memory_space<vmem>>, vector<1x1x8xf32>
    %43 = vector.shape_cast %42 : vector<1x1x8xf32> to vector<1x8xf32>
    %44 = vector.broadcast %43 : vector<1x8xf32> to vector<8x8xf32>
    %45 = arith.addf %41, %44 : vector<8x8xf32>
    %cst_32 = arith.constant dense<0.000000e+00> : vector<8x8xf32>
    %46 = tpu.matmul %31, %38, %cst_32 {dimension_numbers = #tpu.dot_dimension_numbers<[1], [1], [0], [0], [0, 0, 1, 0], [], []>} : vector<8x8xf32>, vector<8x8xf32>, vector<8x8xf32> -> vector<8x8xf32>
    %cst_33 = arith.constant 0.353553385 : f32
    %47 = vector.broadcast %cst_33 : f32 to vector<8x8xf32>
    %48 = arith.mulf %46, %47 : vector<8x8xf32>
    %cst_34 = arith.constant dense<0xFF800000> : vector<8xf32>
    %49 = vector.multi_reduction <maximumf>, %48, %cst_34 [1] : vector<8x8xf32> to vector<8xf32>
    %50 = vector.shape_cast %49 : vector<8xf32> to vector<8x1xf32>
    %51 = vector.broadcast %50 : vector<8x1xf32> to vector<8x8xf32>
    %52 = arith.subf %48, %51 : vector<8x8xf32>
    %53 = math.exp %52 : vector<8x8xf32>
    %cst_35 = arith.constant dense<0.000000e+00> : vector<8xf32>
    %54 = vector.multi_reduction <add>, %53, %cst_35 [1] : vector<8x8xf32> to vector<8xf32>
    %55 = vector.shape_cast %54 : vector<8xf32> to vector<8x1xf32>
    %56 = vector.broadcast %55 : vector<8x1xf32> to vector<8x8xf32>
    %57 = arith.divf %53, %56 : vector<8x8xf32>
    %cst_36 = arith.constant dense<0.000000e+00> : vector<8x8xf32>
    %58 = tpu.matmul %57, %45, %cst_36 {dimension_numbers = #tpu.dot_dimension_numbers<[1], [0], [0], [1], [0, 0, 1, 1], [], []>} : vector<8x8xf32>, vector<8x8xf32>, vector<8x8xf32> -> vector<8x8xf32>
    %c0_37 = arith.constant 0 : index
    %c0_38 = arith.constant 0 : index
    %c0_39 = arith.constant 0 : index
    %59 = vector.load %arg10[%c0_37, %c0_38, %c0_39] : memref<4x8x32xf32, #tpu.memory_space<vmem>>, vector<1x8x32xf32>
    %60 = vector.shape_cast %59 : vector<1x8x32xf32> to vector<8x32xf32>
    %cst_40 = arith.constant dense<0.000000e+00> : vector<8x32xf32>
    %61 = tpu.matmul %58, %60, %cst_40 {dimension_numbers = #tpu.dot_dimension_numbers<[1], [0], [0], [1], [0, 0, 1, 1], [], []>} : vector<8x8xf32>, vector<8x32xf32>, vector<8x32xf32> -> vector<8x32xf32>
    %62 = arith.addf %24, %61 : vector<8x32xf32>
    %c1 = arith.constant 1 : index
    %c0_41 = arith.constant 0 : index
    %c0_42 = arith.constant 0 : index
    %63 = vector.load %arg4[%c1, %c0_41, %c0_42] : memref<4x8x32xf32, #tpu.memory_space<vmem>>, vector<1x8x32xf32>
    %64 = vector.shape_cast %63 : vector<1x8x32xf32> to vector<8x32xf32>
    %cst_43 = arith.constant dense<0.000000e+00> : vector<8x8xf32>
    %65 = tpu.matmul %23, %64, %cst_43 {dimension_numbers = #tpu.dot_dimension_numbers<[1], [1], [0], [0], [0, 0, 1, 0], [], []>} : vector<8x32xf32>, vector<8x32xf32>, vector<8x8xf32> -> vector<8x8xf32>
    %c1_44 = arith.constant 1 : index
    %c0_45 = arith.constant 0 : index
    %c0_46 = arith.constant 0 : index
    %66 = vector.load %arg5[%c1_44, %c0_45, %c0_46] : memref<4x1x8xf32, #tpu.memory_space<vmem>>, vector<1x1x8xf32>
    %67 = vector.shape_cast %66 : vector<1x1x8xf32> to vector<1x8xf32>
    %68 = vector.broadcast %67 : vector<1x8xf32> to vector<8x8xf32>
    %69 = arith.addf %65, %68 : vector<8x8xf32>
    %c1_47 = arith.constant 1 : index
    %c0_48 = arith.constant 0 : index
    %c0_49 = arith.constant 0 : index
    %70 = vector.load %arg6[%c1_47, %c0_48, %c0_49] : memref<4x8x32xf32, #tpu.memory_space<vmem>>, vector<1x8x32xf32>
    %71 = vector.shape_cast %70 : vector<1x8x32xf32> to vector<8x32xf32>
    %cst_50 = arith.constant dense<0.000000e+00> : vector<8x8xf32>
    %72 = tpu.matmul %23, %71, %cst_50 {dimension_numbers = #tpu.dot_dimension_numbers<[1], [1], [0], [0], [0, 0, 1, 0], [], []>} : vector<8x32xf32>, vector<8x32xf32>, vector<8x8xf32> -> vector<8x8xf32>
    %c1_51 = arith.constant 1 : index
    %c0_52 = arith.constant 0 : index
    %c0_53 = arith.constant 0 : index
    %73 = vector.load %arg7[%c1_51, %c0_52, %c0_53] : memref<4x1x8xf32, #tpu.memory_space<vmem>>, vector<1x1x8xf32>
    %74 = vector.shape_cast %73 : vector<1x1x8xf32> to vector<1x8xf32>
    %75 = vector.broadcast %74 : vector<1x8xf32> to vector<8x8xf32>
    %76 = arith.addf %72, %75 : vector<8x8xf32>
    %c1_54 = arith.constant 1 : index
    %c0_55 = arith.constant 0 : index
    %c0_56 = arith.constant 0 : index
    %77 = vector.load %arg8[%c1_54, %c0_55, %c0_56] : memref<4x8x32xf32, #tpu.memory_space<vmem>>, vector<1x8x32xf32>
    %78 = vector.shape_cast %77 : vector<1x8x32xf32> to vector<8x32xf32>
    %cst_57 = arith.constant dense<0.000000e+00> : vector<8x8xf32>
    %79 = tpu.matmul %23, %78, %cst_57 {dimension_numbers = #tpu.dot_dimension_numbers<[1], [1], [0], [0], [0, 0, 1, 0], [], []>} : vector<8x32xf32>, vector<8x32xf32>, vector<8x8xf32> -> vector<8x8xf32>
    %c1_58 = arith.constant 1 : index
    %c0_59 = arith.constant 0 : index
    %c0_60 = arith.constant 0 : index
    %80 = vector.load %arg9[%c1_58, %c0_59, %c0_60] : memref<4x1x8xf32, #tpu.memory_space<vmem>>, vector<1x1x8xf32>
    %81 = vector.shape_cast %80 : vector<1x1x8xf32> to vector<1x8xf32>
    %82 = vector.broadcast %81 : vector<1x8xf32> to vector<8x8xf32>
    %83 = arith.addf %79, %82 : vector<8x8xf32>
    %cst_61 = arith.constant dense<0.000000e+00> : vector<8x8xf32>
    %84 = tpu.matmul %69, %76, %cst_61 {dimension_numbers = #tpu.dot_dimension_numbers<[1], [1], [0], [0], [0, 0, 1, 0], [], []>} : vector<8x8xf32>, vector<8x8xf32>, vector<8x8xf32> -> vector<8x8xf32>
    %cst_62 = arith.constant 0.353553385 : f32
    %85 = vector.broadcast %cst_62 : f32 to vector<8x8xf32>
    %86 = arith.mulf %84, %85 : vector<8x8xf32>
    %cst_63 = arith.constant dense<0xFF800000> : vector<8xf32>
    %87 = vector.multi_reduction <maximumf>, %86, %cst_63 [1] : vector<8x8xf32> to vector<8xf32>
    %88 = vector.shape_cast %87 : vector<8xf32> to vector<8x1xf32>
    %89 = vector.broadcast %88 : vector<8x1xf32> to vector<8x8xf32>
    %90 = arith.subf %86, %89 : vector<8x8xf32>
    %91 = math.exp %90 : vector<8x8xf32>
    %cst_64 = arith.constant dense<0.000000e+00> : vector<8xf32>
    %92 = vector.multi_reduction <add>, %91, %cst_64 [1] : vector<8x8xf32> to vector<8xf32>
    %93 = vector.shape_cast %92 : vector<8xf32> to vector<8x1xf32>
    %94 = vector.broadcast %93 : vector<8x1xf32> to vector<8x8xf32>
    %95 = arith.divf %91, %94 : vector<8x8xf32>
    %cst_65 = arith.constant dense<0.000000e+00> : vector<8x8xf32>
    %96 = tpu.matmul %95, %83, %cst_65 {dimension_numbers = #tpu.dot_dimension_numbers<[1], [0], [0], [1], [0, 0, 1, 1], [], []>} : vector<8x8xf32>, vector<8x8xf32>, vector<8x8xf32> -> vector<8x8xf32>
    %c1_66 = arith.constant 1 : index
    %c0_67 = arith.constant 0 : index
    %c0_68 = arith.constant 0 : index
    %97 = vector.load %arg10[%c1_66, %c0_67, %c0_68] : memref<4x8x32xf32, #tpu.memory_space<vmem>>, vector<1x8x32xf32>
    %98 = vector.shape_cast %97 : vector<1x8x32xf32> to vector<8x32xf32>
    %cst_69 = arith.constant dense<0.000000e+00> : vector<8x32xf32>
    %99 = tpu.matmul %96, %98, %cst_69 {dimension_numbers = #tpu.dot_dimension_numbers<[1], [0], [0], [1], [0, 0, 1, 1], [], []>} : vector<8x8xf32>, vector<8x32xf32>, vector<8x32xf32> -> vector<8x32xf32>
    %100 = arith.addf %62, %99 : vector<8x32xf32>
    %c2 = arith.constant 2 : index
    %c0_70 = arith.constant 0 : index
    %c0_71 = arith.constant 0 : index
    %101 = vector.load %arg4[%c2, %c0_70, %c0_71] : memref<4x8x32xf32, #tpu.memory_space<vmem>>, vector<1x8x32xf32>
    %102 = vector.shape_cast %101 : vector<1x8x32xf32> to vector<8x32xf32>
    %cst_72 = arith.constant dense<0.000000e+00> : vector<8x8xf32>
    %103 = tpu.matmul %23, %102, %cst_72 {dimension_numbers = #tpu.dot_dimension_numbers<[1], [1], [0], [0], [0, 0, 1, 0], [], []>} : vector<8x32xf32>, vector<8x32xf32>, vector<8x8xf32> -> vector<8x8xf32>
    %c2_73 = arith.constant 2 : index
    %c0_74 = arith.constant 0 : index
    %c0_75 = arith.constant 0 : index
    %104 = vector.load %arg5[%c2_73, %c0_74, %c0_75] : memref<4x1x8xf32, #tpu.memory_space<vmem>>, vector<1x1x8xf32>
    %105 = vector.shape_cast %104 : vector<1x1x8xf32> to vector<1x8xf32>
    %106 = vector.broadcast %105 : vector<1x8xf32> to vector<8x8xf32>
    %107 = arith.addf %103, %106 : vector<8x8xf32>
    %c2_76 = arith.constant 2 : index
    %c0_77 = arith.constant 0 : index
    %c0_78 = arith.constant 0 : index
    %108 = vector.load %arg6[%c2_76, %c0_77, %c0_78] : memref<4x8x32xf32, #tpu.memory_space<vmem>>, vector<1x8x32xf32>
    %109 = vector.shape_cast %108 : vector<1x8x32xf32> to vector<8x32xf32>
    %cst_79 = arith.constant dense<0.000000e+00> : vector<8x8xf32>
    %110 = tpu.matmul %23, %109, %cst_79 {dimension_numbers = #tpu.dot_dimension_numbers<[1], [1], [0], [0], [0, 0, 1, 0], [], []>} : vector<8x32xf32>, vector<8x32xf32>, vector<8x8xf32> -> vector<8x8xf32>
    %c2_80 = arith.constant 2 : index
    %c0_81 = arith.constant 0 : index
    %c0_82 = arith.constant 0 : index
    %111 = vector.load %arg7[%c2_80, %c0_81, %c0_82] : memref<4x1x8xf32, #tpu.memory_space<vmem>>, vector<1x1x8xf32>
    %112 = vector.shape_cast %111 : vector<1x1x8xf32> to vector<1x8xf32>
    %113 = vector.broadcast %112 : vector<1x8xf32> to vector<8x8xf32>
    %114 = arith.addf %110, %113 : vector<8x8xf32>
    %c2_83 = arith.constant 2 : index
    %c0_84 = arith.constant 0 : index
    %c0_85 = arith.constant 0 : index
    %115 = vector.load %arg8[%c2_83, %c0_84, %c0_85] : memref<4x8x32xf32, #tpu.memory_space<vmem>>, vector<1x8x32xf32>
    %116 = vector.shape_cast %115 : vector<1x8x32xf32> to vector<8x32xf32>
    %cst_86 = arith.constant dense<0.000000e+00> : vector<8x8xf32>
    %117 = tpu.matmul %23, %116, %cst_86 {dimension_numbers = #tpu.dot_dimension_numbers<[1], [1], [0], [0], [0, 0, 1, 0], [], []>} : vector<8x32xf32>, vector<8x32xf32>, vector<8x8xf32> -> vector<8x8xf32>
    %c2_87 = arith.constant 2 : index
    %c0_88 = arith.constant 0 : index
    %c0_89 = arith.constant 0 : index
    %118 = vector.load %arg9[%c2_87, %c0_88, %c0_89] : memref<4x1x8xf32, #tpu.memory_space<vmem>>, vector<1x1x8xf32>
    %119 = vector.shape_cast %118 : vector<1x1x8xf32> to vector<1x8xf32>
    %120 = vector.broadcast %119 : vector<1x8xf32> to vector<8x8xf32>
    %121 = arith.addf %117, %120 : vector<8x8xf32>
    %cst_90 = arith.constant dense<0.000000e+00> : vector<8x8xf32>
    %122 = tpu.matmul %107, %114, %cst_90 {dimension_numbers = #tpu.dot_dimension_numbers<[1], [1], [0], [0], [0, 0, 1, 0], [], []>} : vector<8x8xf32>, vector<8x8xf32>, vector<8x8xf32> -> vector<8x8xf32>
    %cst_91 = arith.constant 0.353553385 : f32
    %123 = vector.broadcast %cst_91 : f32 to vector<8x8xf32>
    %124 = arith.mulf %122, %123 : vector<8x8xf32>
    %cst_92 = arith.constant dense<0xFF800000> : vector<8xf32>
    %125 = vector.multi_reduction <maximumf>, %124, %cst_92 [1] : vector<8x8xf32> to vector<8xf32>
    %126 = vector.shape_cast %125 : vector<8xf32> to vector<8x1xf32>
    %127 = vector.broadcast %126 : vector<8x1xf32> to vector<8x8xf32>
    %128 = arith.subf %124, %127 : vector<8x8xf32>
    %129 = math.exp %128 : vector<8x8xf32>
    %cst_93 = arith.constant dense<0.000000e+00> : vector<8xf32>
    %130 = vector.multi_reduction <add>, %129, %cst_93 [1] : vector<8x8xf32> to vector<8xf32>
    %131 = vector.shape_cast %130 : vector<8xf32> to vector<8x1xf32>
    %132 = vector.broadcast %131 : vector<8x1xf32> to vector<8x8xf32>
    %133 = arith.divf %129, %132 : vector<8x8xf32>
    %cst_94 = arith.constant dense<0.000000e+00> : vector<8x8xf32>
    %134 = tpu.matmul %133, %121, %cst_94 {dimension_numbers = #tpu.dot_dimension_numbers<[1], [0], [0], [1], [0, 0, 1, 1], [], []>} : vector<8x8xf32>, vector<8x8xf32>, vector<8x8xf32> -> vector<8x8xf32>
    %c2_95 = arith.constant 2 : index
    %c0_96 = arith.constant 0 : index
    %c0_97 = arith.constant 0 : index
    %135 = vector.load %arg10[%c2_95, %c0_96, %c0_97] : memref<4x8x32xf32, #tpu.memory_space<vmem>>, vector<1x8x32xf32>
    %136 = vector.shape_cast %135 : vector<1x8x32xf32> to vector<8x32xf32>
    %cst_98 = arith.constant dense<0.000000e+00> : vector<8x32xf32>
    %137 = tpu.matmul %134, %136, %cst_98 {dimension_numbers = #tpu.dot_dimension_numbers<[1], [0], [0], [1], [0, 0, 1, 1], [], []>} : vector<8x8xf32>, vector<8x32xf32>, vector<8x32xf32> -> vector<8x32xf32>
    %138 = arith.addf %100, %137 : vector<8x32xf32>
    %c3 = arith.constant 3 : index
    %c0_99 = arith.constant 0 : index
    %c0_100 = arith.constant 0 : index
    %139 = vector.load %arg4[%c3, %c0_99, %c0_100] : memref<4x8x32xf32, #tpu.memory_space<vmem>>, vector<1x8x32xf32>
    %140 = vector.shape_cast %139 : vector<1x8x32xf32> to vector<8x32xf32>
    %cst_101 = arith.constant dense<0.000000e+00> : vector<8x8xf32>
    %141 = tpu.matmul %23, %140, %cst_101 {dimension_numbers = #tpu.dot_dimension_numbers<[1], [1], [0], [0], [0, 0, 1, 0], [], []>} : vector<8x32xf32>, vector<8x32xf32>, vector<8x8xf32> -> vector<8x8xf32>
    %c3_102 = arith.constant 3 : index
    %c0_103 = arith.constant 0 : index
    %c0_104 = arith.constant 0 : index
    %142 = vector.load %arg5[%c3_102, %c0_103, %c0_104] : memref<4x1x8xf32, #tpu.memory_space<vmem>>, vector<1x1x8xf32>
    %143 = vector.shape_cast %142 : vector<1x1x8xf32> to vector<1x8xf32>
    %144 = vector.broadcast %143 : vector<1x8xf32> to vector<8x8xf32>
    %145 = arith.addf %141, %144 : vector<8x8xf32>
    %c3_105 = arith.constant 3 : index
    %c0_106 = arith.constant 0 : index
    %c0_107 = arith.constant 0 : index
    %146 = vector.load %arg6[%c3_105, %c0_106, %c0_107] : memref<4x8x32xf32, #tpu.memory_space<vmem>>, vector<1x8x32xf32>
    %147 = vector.shape_cast %146 : vector<1x8x32xf32> to vector<8x32xf32>
    %cst_108 = arith.constant dense<0.000000e+00> : vector<8x8xf32>
    %148 = tpu.matmul %23, %147, %cst_108 {dimension_numbers = #tpu.dot_dimension_numbers<[1], [1], [0], [0], [0, 0, 1, 0], [], []>} : vector<8x32xf32>, vector<8x32xf32>, vector<8x8xf32> -> vector<8x8xf32>
    %c3_109 = arith.constant 3 : index
    %c0_110 = arith.constant 0 : index
    %c0_111 = arith.constant 0 : index
    %149 = vector.load %arg7[%c3_109, %c0_110, %c0_111] : memref<4x1x8xf32, #tpu.memory_space<vmem>>, vector<1x1x8xf32>
    %150 = vector.shape_cast %149 : vector<1x1x8xf32> to vector<1x8xf32>
    %151 = vector.broadcast %150 : vector<1x8xf32> to vector<8x8xf32>
    %152 = arith.addf %148, %151 : vector<8x8xf32>
    %c3_112 = arith.constant 3 : index
    %c0_113 = arith.constant 0 : index
    %c0_114 = arith.constant 0 : index
    %153 = vector.load %arg8[%c3_112, %c0_113, %c0_114] : memref<4x8x32xf32, #tpu.memory_space<vmem>>, vector<1x8x32xf32>
    %154 = vector.shape_cast %153 : vector<1x8x32xf32> to vector<8x32xf32>
    %cst_115 = arith.constant dense<0.000000e+00> : vector<8x8xf32>
    %155 = tpu.matmul %23, %154, %cst_115 {dimension_numbers = #tpu.dot_dimension_numbers<[1], [1], [0], [0], [0, 0, 1, 0], [], []>} : vector<8x32xf32>, vector<8x32xf32>, vector<8x8xf32> -> vector<8x8xf32>
    %c3_116 = arith.constant 3 : index
    %c0_117 = arith.constant 0 : index
    %c0_118 = arith.constant 0 : index
    %156 = vector.load %arg9[%c3_116, %c0_117, %c0_118] : memref<4x1x8xf32, #tpu.memory_space<vmem>>, vector<1x1x8xf32>
    %157 = vector.shape_cast %156 : vector<1x1x8xf32> to vector<1x8xf32>
    %158 = vector.broadcast %157 : vector<1x8xf32> to vector<8x8xf32>
    %159 = arith.addf %155, %158 : vector<8x8xf32>
    %cst_119 = arith.constant dense<0.000000e+00> : vector<8x8xf32>
    %160 = tpu.matmul %145, %152, %cst_119 {dimension_numbers = #tpu.dot_dimension_numbers<[1], [1], [0], [0], [0, 0, 1, 0], [], []>} : vector<8x8xf32>, vector<8x8xf32>, vector<8x8xf32> -> vector<8x8xf32>
    %cst_120 = arith.constant 0.353553385 : f32
    %161 = vector.broadcast %cst_120 : f32 to vector<8x8xf32>
    %162 = arith.mulf %160, %161 : vector<8x8xf32>
    %cst_121 = arith.constant dense<0xFF800000> : vector<8xf32>
    %163 = vector.multi_reduction <maximumf>, %162, %cst_121 [1] : vector<8x8xf32> to vector<8xf32>
    %164 = vector.shape_cast %163 : vector<8xf32> to vector<8x1xf32>
    %165 = vector.broadcast %164 : vector<8x1xf32> to vector<8x8xf32>
    %166 = arith.subf %162, %165 : vector<8x8xf32>
    %167 = math.exp %166 : vector<8x8xf32>
    %cst_122 = arith.constant dense<0.000000e+00> : vector<8xf32>
    %168 = vector.multi_reduction <add>, %167, %cst_122 [1] : vector<8x8xf32> to vector<8xf32>
    %169 = vector.shape_cast %168 : vector<8xf32> to vector<8x1xf32>
    %170 = vector.broadcast %169 : vector<8x1xf32> to vector<8x8xf32>
    %171 = arith.divf %167, %170 : vector<8x8xf32>
    %cst_123 = arith.constant dense<0.000000e+00> : vector<8x8xf32>
    %172 = tpu.matmul %171, %159, %cst_123 {dimension_numbers = #tpu.dot_dimension_numbers<[1], [0], [0], [1], [0, 0, 1, 1], [], []>} : vector<8x8xf32>, vector<8x8xf32>, vector<8x8xf32> -> vector<8x8xf32>
    %c3_124 = arith.constant 3 : index
    %c0_125 = arith.constant 0 : index
    %c0_126 = arith.constant 0 : index
    %173 = vector.load %arg10[%c3_124, %c0_125, %c0_126] : memref<4x8x32xf32, #tpu.memory_space<vmem>>, vector<1x8x32xf32>
    %174 = vector.shape_cast %173 : vector<1x8x32xf32> to vector<8x32xf32>
    %cst_127 = arith.constant dense<0.000000e+00> : vector<8x32xf32>
    %175 = tpu.matmul %172, %174, %cst_127 {dimension_numbers = #tpu.dot_dimension_numbers<[1], [0], [0], [1], [0, 0, 1, 1], [], []>} : vector<8x8xf32>, vector<8x32xf32>, vector<8x32xf32> -> vector<8x32xf32>
    %176 = arith.addf %138, %175 : vector<8x32xf32>
    %177 = arith.addf %1, %176 : vector<8x32xf32>
    %c0_128 = arith.constant 0 : index
    %c0_129 = arith.constant 0 : index
    %178 = vector.load %arg11[%c0_128, %c0_129] : memref<1x32xf32, #tpu.memory_space<vmem>>, vector<1x32xf32>
    %179 = vector.broadcast %178 : vector<1x32xf32> to vector<8x32xf32>
    %180 = arith.addf %177, %179 : vector<8x32xf32>
    %c0_130 = arith.constant 0 : index
    %c0_131 = arith.constant 0 : index
    %181 = vector.load %arg12[%c0_130, %c0_131] : memref<1x32xf32, #tpu.memory_space<vmem>>, vector<1x32xf32>
    %c0_132 = arith.constant 0 : index
    %c0_133 = arith.constant 0 : index
    %182 = vector.load %arg13[%c0_132, %c0_133] : memref<1x32xf32, #tpu.memory_space<vmem>>, vector<1x32xf32>
    %cst_134 = arith.constant dense<0.000000e+00> : vector<8xf32>
    %183 = vector.multi_reduction <add>, %180, %cst_134 [1] : vector<8x32xf32> to vector<8xf32>
    %184 = vector.shape_cast %183 : vector<8xf32> to vector<8x1xf32>
    %cst_135 = arith.constant 3.200000e+01 : f32
    %185 = vector.broadcast %cst_135 : f32 to vector<8x1xf32>
    %186 = arith.divf %184, %185 : vector<8x1xf32>
    %187 = vector.broadcast %186 : vector<8x1xf32> to vector<8x32xf32>
    %188 = arith.subf %180, %187 : vector<8x32xf32>
    %189 = arith.mulf %188, %188 : vector<8x32xf32>
    %cst_136 = arith.constant dense<0.000000e+00> : vector<8xf32>
    %190 = vector.multi_reduction <add>, %189, %cst_136 [1] : vector<8x32xf32> to vector<8xf32>
    %191 = vector.shape_cast %190 : vector<8xf32> to vector<8x1xf32>
    %cst_137 = arith.constant 3.100000e+01 : f32
    %192 = vector.broadcast %cst_137 : f32 to vector<8x1xf32>
    %193 = arith.divf %191, %192 : vector<8x1xf32>
    %194 = vector.broadcast %181 : vector<1x32xf32> to vector<8x32xf32>
    %195 = arith.mulf %194, %188 : vector<8x32xf32>
    %196 = math.sqrt %193 : vector<8x1xf32>
    %cst_138 = arith.constant 9.99999997E-7 : f32
    %197 = vector.broadcast %cst_138 : f32 to vector<8x1xf32>
    %198 = arith.addf %196, %197 : vector<8x1xf32>
    %199 = vector.broadcast %198 : vector<8x1xf32> to vector<8x32xf32>
    %200 = arith.divf %195, %199 : vector<8x32xf32>
    %201 = vector.broadcast %182 : vector<1x32xf32> to vector<8x32xf32>
    %202 = arith.addf %200, %201 : vector<8x32xf32>
    %c0_139 = arith.constant 0 : index
    %c0_140 = arith.constant 0 : index
    %203 = vector.load %arg14[%c0_139, %c0_140] : memref<128x32xf32, #tpu.memory_space<vmem>>, vector<128x32xf32>
    %cst_141 = arith.constant dense<0.000000e+00> : vector<8x128xf32>
    %204 = tpu.matmul %202, %203, %cst_141 {dimension_numbers = #tpu.dot_dimension_numbers<[1], [1], [0], [0], [0, 0, 1, 0], [], []>} : vector<8x32xf32>, vector<128x32xf32>, vector<8x128xf32> -> vector<8x128xf32>
    %c0_142 = arith.constant 0 : index
    %c0_143 = arith.constant 0 : index
    %205 = vector.load %arg15[%c0_142, %c0_143] : memref<1x128xf32, #tpu.memory_space<vmem>>, vector<1x128xf32>
    %206 = vector.broadcast %205 : vector<1x128xf32> to vector<8x128xf32>
    %207 = arith.addf %204, %206 : vector<8x128xf32>
    %cst_144 = arith.constant 5.000000e-01 : f32
    %208 = vector.broadcast %cst_144 : f32 to vector<8x128xf32>
    %209 = arith.mulf %208, %207 : vector<8x128xf32>
    %cst_145 = arith.constant 0.707106769 : f32
    %210 = vector.broadcast %cst_145 : f32 to vector<8x128xf32>
    %211 = arith.mulf %207, %210 : vector<8x128xf32>
    %cst_146 = arith.constant 0.000000e+00 : f32
    %212 = vector.broadcast %cst_146 : f32 to vector<8x128xf32>
    %213 = arith.cmpf oge, %211, %212 : vector<8x128xf32>
    %cst_147 = arith.constant 1.000000e+00 : f32
    %cst_148 = arith.constant -1.000000e+00 : f32
    %214 = vector.broadcast %cst_147 : f32 to vector<8x128xf32>
    %215 = vector.broadcast %cst_148 : f32 to vector<8x128xf32>
    %216 = arith.select %213, %214, %215 : vector<8x128xi1>, vector<8x128xf32>
    %217 = math.absf %211 : vector<8x128xf32>
    %cst_149 = arith.constant 0.327591091 : f32
    %218 = vector.broadcast %cst_149 : f32 to vector<8x128xf32>
    %219 = arith.mulf %218, %217 : vector<8x128xf32>
    %cst_150 = arith.constant 1.000000e+00 : f32
    %220 = vector.broadcast %cst_150 : f32 to vector<8x128xf32>
    %221 = arith.addf %220, %219 : vector<8x128xf32>
    %cst_151 = arith.constant 1.000000e+00 : f32
    %222 = vector.broadcast %cst_151 : f32 to vector<8x128xf32>
    %223 = arith.divf %222, %221 : vector<8x128xf32>
    %cst_152 = arith.constant 1.06140542 : f32
    %224 = vector.broadcast %cst_152 : f32 to vector<8x128xf32>
    %225 = arith.mulf %224, %223 : vector<8x128xf32>
    %cst_153 = arith.constant -1.45315206 : f32
    %226 = vector.broadcast %cst_153 : f32 to vector<8x128xf32>
    %227 = arith.addf %225, %226 : vector<8x128xf32>
    %228 = arith.mulf %227, %223 : vector<8x128xf32>
    %cst_154 = arith.constant 1.42141378 : f32
    %229 = vector.broadcast %cst_154 : f32 to vector<8x128xf32>
    %230 = arith.addf %228, %229 : vector<8x128xf32>
    %231 = arith.mulf %230, %223 : vector<8x128xf32>
    %cst_155 = arith.constant -0.284496725 : f32
    %232 = vector.broadcast %cst_155 : f32 to vector<8x128xf32>
    %233 = arith.addf %231, %232 : vector<8x128xf32>
    %234 = arith.mulf %233, %223 : vector<8x128xf32>
    %cst_156 = arith.constant 0.254829586 : f32
    %235 = vector.broadcast %cst_156 : f32 to vector<8x128xf32>
    %236 = arith.addf %234, %235 : vector<8x128xf32>
    %237 = arith.mulf %236, %223 : vector<8x128xf32>
    %cst_157 = arith.constant 0.000000e+00 : f32
    %238 = vector.broadcast %cst_157 : f32 to vector<8x128xf32>
    %239 = arith.subf %238, %217 : vector<8x128xf32>
    %240 = arith.mulf %239, %217 : vector<8x128xf32>
    %241 = math.exp %240 : vector<8x128xf32>
    %242 = arith.mulf %237, %241 : vector<8x128xf32>
    %cst_158 = arith.constant 1.000000e+00 : f32
    %243 = vector.broadcast %cst_158 : f32 to vector<8x128xf32>
    %244 = arith.subf %243, %242 : vector<8x128xf32>
    %245 = arith.mulf %216, %244 : vector<8x128xf32>
    %cst_159 = arith.constant 1.000000e+00 : f32
    %246 = vector.broadcast %cst_159 : f32 to vector<8x128xf32>
    %247 = arith.addf %246, %245 : vector<8x128xf32>
    %248 = arith.mulf %209, %247 : vector<8x128xf32>
    %c0_160 = arith.constant 0 : index
    %c0_161 = arith.constant 0 : index
    %249 = vector.load %arg16[%c0_160, %c0_161] : memref<32x128xf32, #tpu.memory_space<vmem>>, vector<32x128xf32>
    %cst_162 = arith.constant dense<0.000000e+00> : vector<8x32xf32>
    %250 = tpu.matmul %248, %249, %cst_162 {dimension_numbers = #tpu.dot_dimension_numbers<[1], [1], [0], [0], [0, 0, 1, 0], [], []>} : vector<8x128xf32>, vector<32x128xf32>, vector<8x32xf32> -> vector<8x32xf32>
    %c0_163 = arith.constant 0 : index
    %c0_164 = arith.constant 0 : index
    %251 = vector.load %arg17[%c0_163, %c0_164] : memref<1x32xf32, #tpu.memory_space<vmem>>, vector<1x32xf32>
    %252 = vector.broadcast %251 : vector<1x32xf32> to vector<8x32xf32>
    %253 = arith.addf %250, %252 : vector<8x32xf32>
    %254 = arith.addf %180, %253 : vector<8x32xf32>
    %c0_165 = arith.constant 0 : index
    %c0_166 = arith.constant 0 : index
    %c0_167 = arith.constant 0 : index
    %255 = vector.load %arg18[%c0_165, %c0_166, %c0_167] : memref<1x8x32xf32, #tpu.memory_space<vmem>>, vector<1x8x32xf32>
    %256 = vector.shape_cast %255 : vector<1x8x32xf32> to vector<8x32xf32>
    %257 = vector.shape_cast %254 : vector<8x32xf32> to vector<1x8x32xf32>
    tpu.vector_store %arg18[%c0_165, %c0_166, %c0_167], %257 {strides = array<i32>} : memref<1x8x32xf32, #tpu.memory_space<vmem>>, vector<1x8x32xf32>,
    return
  }
  func.func @transform_0(%arg0: i32) -> (i32, i32, i32) {
    %c0_i32 = arith.constant 0 : i32
    %c0_i32_0 = arith.constant 0 : i32
    %c0_i32_1 = arith.constant 0 : i32
    return %arg0, %c0_i32, %c0_i32_0 : i32, i32, i32
  }
  func.func @transform_1(%arg0: i32) -> (i32, i32) {
    %c0_i32 = arith.constant 0 : i32
    %c0_i32_0 = arith.constant 0 : i32
    %c0_i32_1 = arith.constant 0 : i32
    return %c0_i32, %c0_i32_0 : i32, i32
  }
  func.func @transform_2(%arg0: i32) -> (i32, i32) {
    %c0_i32 = arith.constant 0 : i32
    %c0_i32_0 = arith.constant 0 : i32
    %c0_i32_1 = arith.constant 0 : i32
    return %c0_i32, %c0_i32_0 : i32, i32
  }
  func.func @transform_3(%arg0: i32) -> (i32, i32, i32) {
    %c0_i32 = arith.constant 0 : i32
    %c0_i32_0 = arith.constant 0 : i32
    %c0_i32_1 = arith.constant 0 : i32
    %c0_i32_2 = arith.constant 0 : i32
    return %c0_i32, %c0_i32_0, %c0_i32_1 : i32, i32, i32
  }
  func.func @transform_4(%arg0: i32) -> (i32, i32, i32) {
    %c0_i32 = arith.constant 0 : i32
    %c0_i32_0 = arith.constant 0 : i32
    %c0_i32_1 = arith.constant 0 : i32
    %c0_i32_2 = arith.constant 0 : i32
    return %c0_i32, %c0_i32_0, %c0_i32_1 : i32, i32, i32
  }
  func.func @transform_5(%arg0: i32) -> (i32, i32, i32) {
    %c0_i32 = arith.constant 0 : i32
    %c0_i32_0 = arith.constant 0 : i32
    %c0_i32_1 = arith.constant 0 : i32
    %c0_i32_2 = arith.constant 0 : i32
    return %c0_i32, %c0_i32_0, %c0_i32_1 : i32, i32, i32
  }
  func.func @transform_6(%arg0: i32) -> (i32, i32, i32) {
    %c0_i32 = arith.constant 0 : i32
    %c0_i32_0 = arith.constant 0 : i32
    %c0_i32_1 = arith.constant 0 : i32
    %c0_i32_2 = arith.constant 0 : i32
    return %c0_i32, %c0_i32_0, %c0_i32_1 : i32, i32, i32
  }
  func.func @transform_7(%arg0: i32) -> (i32, i32, i32) {
    %c0_i32 = arith.constant 0 : i32
    %c0_i32_0 = arith.constant 0 : i32
    %c0_i32_1 = arith.constant 0 : i32
    %c0_i32_2 = arith.constant 0 : i32
    return %c0_i32, %c0_i32_0, %c0_i32_1 : i32, i32, i32
  }
  func.func @transform_8(%arg0: i32) -> (i32, i32, i32) {
    %c0_i32 = arith.constant 0 : i32
    %c0_i32_0 = arith.constant 0 : i32
    %c0_i32_1 = arith.constant 0 : i32
    %c0_i32_2 = arith.constant 0 : i32
    return %c0_i32, %c0_i32_0, %c0_i32_1 : i32, i32, i32
  }
  func.func @transform_9(%arg0: i32) -> (i32, i32, i32) {
    %c0_i32 = arith.constant 0 : i32
    %c0_i32_0 = arith.constant 0 : i32
    %c0_i32_1 = arith.constant 0 : i32
    %c0_i32_2 = arith.constant 0 : i32
    return %c0_i32, %c0_i32_0, %c0_i32_1 : i32, i32, i32
  }
  func.func @transform_10(%arg0: i32) -> (i32, i32) {
    %c0_i32 = arith.constant 0 : i32
    %c0_i32_0 = arith.constant 0 : i32
    %c0_i32_1 = arith.constant 0 : i32
    return %c0_i32, %c0_i32_0 : i32, i32
  }
  func.func @transform_11(%arg0: i32) -> (i32, i32) {
    %c0_i32 = arith.constant 0 : i32
    %c0_i32_0 = arith.constant 0 : i32
    %c0_i32_1 = arith.constant 0 : i32
    return %c0_i32, %c0_i32_0 : i32, i32
  }
  func.func @transform_12(%arg0: i32) -> (i32, i32) {
    %c0_i32 = arith.constant 0 : i32
    %c0_i32_0 = arith.constant 0 : i32
    %c0_i32_1 = arith.constant 0 : i32
    return %c0_i32, %c0_i32_0 : i32, i32
  }
  func.func @transform_13(%arg0: i32) -> (i32, i32) {
    %c0_i32 = arith.constant 0 : i32
    %c0_i32_0 = arith.constant 0 : i32
    %c0_i32_1 = arith.constant 0 : i32
    return %c0_i32, %c0_i32_0 : i32, i32
  }
  func.func @transform_14(%arg0: i32) -> (i32, i32) {
    %c0_i32 = arith.constant 0 : i32
    %c0_i32_0 = arith.constant 0 : i32
    %c0_i32_1 = arith.constant 0 : i32
    return %c0_i32, %c0_i32_0 : i32, i32
  }
  func.func @transform_15(%arg0: i32) -> (i32, i32) {
    %c0_i32 = arith.constant 0 : i32
    %c0_i32_0 = arith.constant 0 : i32
    %c0_i32_1 = arith.constant 0 : i32
    return %c0_i32, %c0_i32_0 : i32, i32
  }
  func.func @transform_16(%arg0: i32) -> (i32, i32) {
    %c0_i32 = arith.constant 0 : i32
    %c0_i32_0 = arith.constant 0 : i32
    %c0_i32_1 = arith.constant 0 : i32
    return %c0_i32, %c0_i32_0 : i32, i32
  }
  func.func @transform_17(%arg0: i32) -> (i32, i32, i32) {
    %c0_i32 = arith.constant 0 : i32
    %c0_i32_0 = arith.constant 0 : i32
    %c0_i32_1 = arith.constant 0 : i32
    return %arg0, %c0_i32, %c0_i32_0 : i32, i32, i32
  }
}

</mosaic_0001>

<bundles_post_ra>
// kernel: tpu_custom_call.1
= control target key start
LH: loop header
LB: loop body
LE: loop exit
PB: predicated region body
PF: predicated region fallthrough
CT: control target
= control target key end

     0   :  { %s4185_s0 = inlined_call_operand.hbm [shape: f32[2,8,32], index: 0, kind: input, shape index: {}]   ;;  %s4186_s1 = inlined_call_operand.hbm [shape: f32[1,32], index: 1, kind: input, shape index: {}]   ;;  %s4187_s2 = inlined_call_operand.hbm [shape: f32[1,32], index: 2, kind: input, shape index: {}]   ;;  %s4188_s3 = inlined_call_operand.vmem [shape: f32[4,8,32], index: 3, kind: input, shape index: {}]   ;;  %s4189_s4 = inlined_call_operand.vmem [shape: f32[4,1,8], index: 4, kind: input, shape index: {}]   ;;  %s4190_s5 = inlined_call_operand.vmem [shape: f32[4,8,32], index: 5, kind: input, shape index: {}]   ;;  %s4191_s6 = inlined_call_operand.vmem [shape: f32[4,1,8], index: 6, kind: input, shape index: {}]   ;;  %s4192_s7 = inlined_call_operand.vmem [shape: f32[4,8,32], index: 7, kind: input, shape index: {}]   ;;  %s4193_s8 = inlined_call_operand.vmem [shape: f32[4,1,8], index: 8, kind: input, shape index: {}]   ;;  %s4194_s9 = inlined_call_operand.vmem [shape: f32[4,8,32], index: 9, kind: input, shape index: {}]   ;;  %s4195_s10 = inlined_call_operand.vmem [shape: f32[1,32], index: 10, kind: input, shape index: {}]   ;;  %s4196_s11 = inlined_call_operand.vmem [shape: f32[1,32], index: 11, kind: input, shape index: {}]   ;;  %s4197_s12 = inlined_call_operand.vmem [shape: f32[1,32], index: 12, kind: input, shape index: {}]   ;;  %s4198_s13 = inlined_call_operand.vmem [shape: f32[128,32], index: 13, kind: input, shape index: {}]   ;;  %s4199_s14 = inlined_call_operand.vmem [shape: f32[1,128], index: 14, kind: input, shape index: {}]   ;;  %s4200_s15 = inlined_call_operand.vmem [shape: f32[32,128], index: 15, kind: input, shape index: {}]   ;;  %s4201_s16 = inlined_call_operand.vmem [shape: f32[1,32], index: 16, kind: input, shape index: {}]   ;;  %s4202_s17 = inlined_call_operand.hbm [shape: f32[2,8,32], index: 17, kind: output, shape index: {}]  }
   0x1   :  { %4217 = sst [smem:[#allocation19_spill]] %s4185_s0 }
   0x2   :  { %4218 = sst [smem:[#allocation20_spill]] %s4186_s1 }
   0x3   :  { %4219 = sst [smem:[#allocation21_spill]] %s4187_s2 }
   0x4   :  { %4220 = sst [smem:[#allocation22_spill]] %s4199_s14 }
   0x5   :  { %4221 = sst [smem:[#allocation23_spill]] %s4201_s16 }
   0x6   :  { %4222 = sst [smem:[#allocation24_spill]] %s4202_s17 }
   0x7   :  { %22 = vsyncpa [#allocation3], 0 }
   0x8   :  { %24 = vsyncpa [#allocation3 + $0x1], 0 }
   0x9   :  { %25 = vsyncpa [#allocation6], 0 }
   0xa   :  { %26 = vsyncpa [#allocation4], 0 }
   0xb   :  { %28 = vsyncpa [#allocation4 + $0x1], 0  ;;  %s3664_s24 = smov 0   ;;  %s3666_s25 = smov 0  }
   0xc   :  { %s3668_s26 = smov 0   ;;  %s3670_s27 = smov 0  }
   0xd LB: > { %4223 = sst [smem:[#allocation12_spill]] %s3553_s24  ;;  %s3685_s28 = sadd.s32 4294967295, %s3565_s27   ;;  %s3565_s27 = sphi %s3670_s27, %s4254_s27   ;;  %s3561_s26 = sphi %s3668_s26, %s4256_s26   ;;  %s3557_s25 = sphi %s3666_s25, %s4258_s25   ;;  %s3553_s24 = sphi %s3664_s24, %s4257_s24  }
   0xe   : > { %4224 = sst [smem:[#allocation13_spill]] %s3561_s26  ;;  %s2970_s29 = sadd.s32 4294967294, %s3565_s27  }
   0xf   : > { %4225 = sst [smem:[#allocation14_spill]] %s3565_s27  ;;  %p54_p0 = scmp.ne.s32.totalorder %s3557_s25, %s3553_s24 }
  0x10   : > { %p4209_p1 = scmp.eq.s32.totalorder %s3685_s28, 0  ;;  %p420_p3 = scmp.eq.s32.totalorder %s2970_s29, 1 }
  0x11   : > { %p2971_p5 = scmp.ge.s32.totalorder %s3565_s27, 1  ;;  %p427_p7 = scmp.lt.s32.totalorder %s3565_s27, 3 }
  0x12   : > { %p3694_p4 = por %p4209_p1, %p54_p0  ;;  %p3699_p6 = por %p420_p3, %p54_p0 }
  0x13   : > { %p3704_p8 = pnand %p2971_p5, %p427_p7  ;;  %s3567_s19 = smov [#allocation5]  }
  0x14   : > { %s4226_s0 = scalar_select %p3694_p4, 1, 0 }
  0x15   : > { %s4227_s30 = scalar_select %p3699_p6, 1, 0 }
  0x16   : > { %s4229_s18 = scalar_select %p3704_p8, 1, 0 }
  0x17   : > { %4228 = sst [smem:[#allocation15_spill]] %s4227_s30  ;;  %s440_s1 = sshll.u32 %s3567_s19, 4  ;;  %s441_s1 = int_to_ptr.vmem [resolvable:$true] %s440_s1 }
  0x18   : > { %p3331_p10 = pneg %p3704_p8  ;;  %s3568_s20 = smov [#allocation7]  }
  0x19   : > { %s451_s21 = sshll.u32 %s3568_s20, 4  ;;  %s3718_s23 = sadd.s32 1, %s3565_s27   ;;  %s452_s21 = int_to_ptr.vmem [resolvable:$true] %s451_s21 }
  0x1a   : > { %p3713_p11 = pnand %p3331_p10, %p4209_p1  ;;  %4231 = sst [smem:[#allocation16_spill]] %s3718_s23 }
  0x1b   : > { %s38_s29 = ssub.s32 %s3565_s27, %s3718_s23  ;;  %s3428_s19 = scalar_lea.vmem %s441_s1, 16 }
  0x1c   : > { %p3419_p12 = pneg %p3713_p11  ;;  %p3429_p13 = scmp.ne.s32.totalorder %s441_s1, %s3428_s19 }
  0x1d   : > { %s3435_s20 = scalar_lea.vmem %s441_s1, 32  ;;  %p3436_p5 = scmp.lt.s32.totalorder %s441_s1, %s441_s1 }
  0x1e   : > { %p3431_p0 = pnand %p3429_p13, %p3419_p12  ;;  %p3437_p7 = scmp.lt.s32.totalorder %s3435_s20, %s3428_s19 }
  0x20   : > { %p3432_p3 = pneg %p3431_p0  ;;  %p3438_p10 = por %p3437_p7, %p3436_p5 }
  0x22   : > { %p3439_p9 = pnand %p3438_p10, %p3432_p3 }
  0x24   : > { %3442 = shalt.err (!%p3439_p9)
}
  0x25   : > { %s4232_s17 = sld [smem:[#allocation20_spill]]  ;;  %s3454_s23 = scalar_lea.vmem %s452_s21, 16 }
  0x26   : > { %p3455_p1 = scmp.ne.s32.totalorder %s452_s21, %s3454_s23  ;;  %s3461_s16 = scalar_lea.vmem %s452_s21, 32 }
  0x27   : > { %p3462_p0 = scmp.lt.s32.totalorder %s452_s21, %s452_s21  ;;  %p3463_p6 = scmp.lt.s32.totalorder %s3461_s16, %s3454_s23 }
  0x28   : > { %p3457_p2 = pnand %p3455_p1, %p3419_p12 }
  0x29   : > { %p3464_p4 = por %p3463_p6, %p3462_p0 }
  0x2a   : > { %p3458_p13 = pneg %p3457_p2 }
  0x2b   : > { %3334 = dma.hbm_to_vmem [thread:$0]  (!%p3713_p11), %s4232_s17, 16, %s441_s1, [#allocation6]  }
  0x2c   : > { %p3465_p5 = pnand %p3464_p4, %p3458_p13 }
  0x2e   : > { %3468 = shalt.err (!%p3465_p5)
}
  0x2f   : > { %s4233_s2 = sld [smem:[#allocation21_spill]]  ;;  %p39_p1 = scmp.eq.s32.totalorder %s38_s29, 0 }
  0x30   : > { %s41_s16 = sadd.s32 1, %s3561_s26  ;;  %p48_p2 = scmp.ne.s32.totalorder %s3561_s26, %s3557_s25 }
  0x31   : > { %p49_p4 = scmp.eq.s32.totalorder %s3565_s27, 0  ;;  %p4235_p9 = scmp.eq.s32.totalorder %s3685_s28, 1 }
  0x32   : > { %s3745_s17 = scalar_select %p39_p1, %s3561_s26, %s41_s16  }
  0x33   : > { %p50_p6 = por %p49_p4, %p48_p2  ;;  %p3749_p12 = por %p4235_p9, %p48_p2 }
  0x34   : > { %4234 = sst [smem:[#allocation17_spill]] %s3745_s17  ;;  %p3348_p3 = scmp.lt.s32.totalorder %s3565_s27, 2 }
  0x35   : > { %3337 = dma.hbm_to_vmem [thread:$0]  (!%p3713_p11), %s4233_s2, 16, %s452_s21, [#allocation6]  }
  0x36   : > { %s4236_s24 = scalar_select %p3749_p12, 1, 0 }
  0x37   : > { %s504_s30 = sand.u32 1, %s3561_s26   ;;  %s2976_s22 = sshll.u32 %s3565_s27, 7 }
  0x38   : > { %4237 = sst [smem:[#allocation18_spill]] %s4236_s24  ;;  %s2975_s1 = sshll.u32 %s504_s30, 3 }
  0x39   : > { %s4238_s20 = sld [smem:[#allocation19_spill]]  ;;  %s508_s29 = scalar_lea.vmem [#allocation2], %s2975_s1 }
  0x3a   : > { %s515_s16 = sshll.u32 %s508_s29, 4  ;;  %p3761_p11 = pnand %p3348_p3, %p50_p6  ;;  %s516_s16 = int_to_ptr.vmem [resolvable:$true] %s515_s16 }
  0x3b   : > { %s505_s17 = scalar_lea.sflag [#allocation3], %s504_s30 }
  0x3c   : > { %p3471_p10 = pneg %p3761_p11 }
  0x3f   : > { %s3759_s21 = scalar_lea.hbm %s4238_s20, %s2976_s22  ;;  %s3474_s19 = scalar_lea.hbm %s4238_s20, 256 }
  0x40   : > { %s3469_s26 = scalar_lea.hbm %s3759_s21, 128  ;;  %p3475_p5 = scmp.lt.s32.totalorder %s3759_s21, %s4238_s20 }
  0x41   : > { %p3470_p7 = scmp.ne.s32.totalorder %s3759_s21, %s3469_s26  ;;  %p3476_p1 = scmp.lt.s32.totalorder %s3474_s19, %s3469_s26 }
  0x43   : > { %p3472_p13 = pnand %p3471_p10, %p3470_p7  ;;  %p3477_p2 = por %p3476_p1, %p3475_p5 }
  0x45   : > { %p3473_p0 = pneg %p3472_p13 }
  0x47   : > { %p3478_p4 = pnand %p3477_p2, %p3473_p0 }
  0x49   : > { %3481 = shalt.err (!%p3478_p4)
}
  0x4a   : > { %s3482_s29 = scalar_lea.vmem %s516_s16, 128  ;;  %s3569_s30 = smov [#allocation2]  }
  0x4b   : > { %p3483_p6 = scmp.ne.s32.totalorder %s516_s16, %s3482_s29  ;;  %s3487_s24 = sshll.u32 %s3569_s30, 4  ;;  %s3488_s24 = int_to_ptr.vmem [resolvable:$false] %s3487_s24 }
  0x4c   : > { %s3489_s14 = scalar_lea.vmem %s3488_s24, 256  ;;  %p3490_p7 = scmp.lt.s32.totalorder %s516_s16, %s3488_s24 }
  0x4d   : > { %p3485_p9 = pnand %p3483_p6, %p3471_p10  ;;  %p3491_p13 = scmp.lt.s32.totalorder %s3489_s14, %s3482_s29 }
  0x4f   : > { %p3486_p3 = pneg %p3485_p9  ;;  %p3492_p12 = por %p3491_p13, %p3490_p7 }
  0x51   : > { %p3493_p8 = pnand %p3492_p12, %p3486_p3 }
  0x53   : > { %3496 = shalt.err (!%p3493_p8)
}
  0x54   : > { %3341 = dma.hbm_to_vmem [thread:$0]  (!%p3761_p11), %s3759_s21, 128, %s516_s16, %s505_s17  }
  0x55   : > { %p4240_p0 = scmp.ne.s32.totalorder %s4229_s18, 0 }
  0x56   : > { %s3782_s26 = sand.u32 (!%p4240_p0), 1, %s3557_s25   ;;  %p4241_p12 = scmp.ne.s32.totalorder (!%p4240_p0), %s4226_s0, 0 }
  0x57   : > { %524 = sbr.rel (%p4240_p0) target bundleno = 4822 (0x12d6), region = 88  ;;  %s2978_s27 = sshll.u32 (!%p4240_p0), %s3782_s26, 3 }
  0x58   : > { %s527_s24 = scalar_lea.sflag (!%p4240_p0), [#allocation3], %s3782_s26  ;;  %s530_s14 = scalar_lea.vmem (!%p4240_p0), [#allocation2], %s2978_s27 }
  0x5c   : > { %3540 = dma.done.wait (%p4241_p12), %s527_s24, 128  }
  0x5d   : > { %3542 = vsyncadd (%p4241_p12), %s527_s24, 4294967168  ;;  %p4242_p8 = scmp.eq.s32.totalorder %s3685_s28, 0 }
  0x5f   : > { %3544 = dma.done.wait (%p4242_p8), [#allocation6], 32   ;;  %p4243_p11 = pmov %p4242_p8 }
  0x60   : > { %vm592_vm0 = vcmask 261120   ;;  %v3796_v0 = vld [vmem:[%s530_s14] sm:$0xff]  ;;  %v3570_v7 = vmov 0.0   ;;  %v3017_v9 = vld [vmem:[%s4188_s3 + $0x10] sm:$0xff]  ;;  %vm3571_vm1 = vmmov 0   ;;  %vm875_vm4 = vcmask 64512  }
  0x61   : > { %3546 = vsyncadd (%p4243_p11), [#allocation6], 4294967264  ;;  %v593_v1 = vsel %vm592_vm0, %v3796_v0, 0.0  ;;  %3153 = vmatprep.subr.mxu1 %v3570_v7  ;;  %3213 = vmatprep.subr.mxu0 %v3570_v7  ;;  %v629_v8 = vld [vmem:[%s4188_s3] sm:$0xff]  ;;  %v2982_v18 = vld [vmem:[#allocation5] ss:$0 sm:$0xff] }
  0x62   : > { %594 = vadd.xlane.f32.xlu0 %v593_v1  ;;  %3154 = vmatpush3.xpose.msk.msra.mxu1 %vm592_vm0, %v629_v8  ;;  %v2983_v21 = vld [vmem:[#allocation7] ss:$0 sm:$0xff]  ;;  %v713_v24 = vld [vmem:[%s4190_s5] sm:$0xff]  ;;  %v2996_v57 = vld [vmem:[%s4188_s3 + $0x8] sm:$0xff]  ;;  %s4244_s22 = sld [smem:[#allocation22_spill]]  ;;  %s3080_s30 = sshll.u32 %s3685_s28, 7 }
  0x63   : > { %3214 = vmatpush3.xpose.msk.msra.mxu0 %vm592_vm0, %v3017_v9  ;;  %3158 = vmatprep.subr.mxu1 %v3570_v7  ;;  %v3027_v25 = vld [vmem:[%s4192_s7 + $0x10] sm:$0xff]  ;;  %v794_v26 = vld [vmem:[%s4192_s7] sm:$0xff]  ;;  %v3001_v58 = vld [vmem:[%s4190_s5 + $0x8] sm:$0xff]  ;;  %s4245_s23 = sld [smem:[#allocation18_spill]]  ;;  %s588_s24 = scalar_lea.vmem [#allocation8], %s2978_s27 }
  0x64   : > { %3223 = vmatprep.subr.mxu0 %v3570_v7  ;;  %3155 = vmatprep.mubr.msk.f32.mxu1 %vm3571_vm1, %v3570_v7  ;;  %v2987_v31 = vld [vmem:[%s4191_s6] ss:$0 sm:$0xff]  ;;  %v3029_v32 = vld [vmem:[%s4193_s8 + $0x2] ss:$0 sm:$0xff]  ;;  %v3006_v59 = vld [vmem:[%s4192_s7 + $0x8] sm:$0xff]  ;;  %s4246_s29 = sld [smem:[#allocation23_spill]] }
  0x65   : > { %3215 = vmatprep.mubr.msk.f32.mxu0 %vm3571_vm1, %v3570_v7  ;;  %v2984_v35 = vld [vmem:[%s4189_s4] ss:$0 sm:$0xff]  ;;  %v3003_v1 = vld [vmem:[%s4191_s6 + $0x1] ss:$0 sm:$0xff]  ;;  %s2881_s14 = sshll.u32 %s588_s24, 4  ;;  %s4247_s18 = sld [smem:[#allocation24_spill]]  ;;  %s2882_s14 = int_to_ptr.vmem [resolvable:$true] %s2881_s14 }
  0x66   : > { %v2990_v40 = vld [vmem:[%s4193_s8] ss:$0 sm:$0xff]  ;;  %s2868_s21 = scalar_lea.sflag [#allocation4], %s3782_s26  ;;  %s3497_s16 = scalar_lea.vmem %s2882_s14, 128 }
  0x67   : > { %p3498_p10 = scmp.ne.s32.totalorder %s2882_s14, %s3497_s16  ;;  %s3573_s28 = smov [#allocation8]  }
  0x68   : > { %s3501_s27 = sshll.u32 %s3573_s28, 4  ;;  %s3502_s27 = int_to_ptr.vmem [resolvable:$false] %s3501_s27 }
  0x69   : > { %p4248_p5 = scmp.ne.s32.totalorder %s4245_s23, 0  ;;  %p3504_p4 = scmp.lt.s32.totalorder %s2882_s14, %s3502_s27 }
  0x6b   : > { %s2879_s17 = scalar_lea.hbm %s4247_s18, %s3080_s30  ;;  %p3499_p1 = pnand %p3498_p10, %p4248_p5 }
  0x6d   : > { %p3500_p2 = pneg %p3499_p1 }
  0xeb   : > { %v595_v2 = vpop.xlane.xlu0 %594 }
  0xec   : > { %v597_v3 = vmul.f32 0.03125, %v595_v2 }
  0xee   : > { %v598_v4 = vsub.f32 %v3796_v0, %v597_v3  ;;  %v2998_v3 = vld [vmem:[%s4189_s4 + $0x1] ss:$0 sm:$0xff] }
  0xf0   : > { %v599_v5 = vmul.f32 %v598_v4, %v598_v4  ;;  %v611_v19 = vmul.f32 %v2982_v18, %v598_v4 }
  0xf2   : > { %v600_v6 = vsel %vm592_vm0, %v599_v5, 0.0 }
  0xf3   : > { %601 = vadd.xlane.f32.xlu0 %v600_v6  ;;  %v3008_v6 = vld [vmem:[%s4193_s8 + $0x1] ss:$0 sm:$0xff] }
 0x17c   : > { %v602_v10 = vpop.xlane.xlu0 %601 }
 0x17d   : > { %v604_v11 = vmul.f32 0.032258064, %v602_v10 }
 0x17f   : > { %3389 = vrsqrt.f32 %v604_v11  ;;  %vm614_vm2 = vcmp.eq.f32.partialorder %v604_v11, inf  ;;  %v617_v14 = vand.u32 2147483648, %v604_v11  ;;  %vm616_vm3 = vcmp.eq.f32.partialorder %v604_v11, 0.0 }
 0x18c   : > { %v3390_v12 = vpop.eup %3389 }
 0x18d   : > { %v613_v13 = vmul.f32 %v3390_v12, %v604_v11 }
 0x18f   : > { %v615_v15 = vsel %vm614_vm2, %v604_v11, %v613_v13 }
 0x190   : > { %v618_v16 = vsel %vm616_vm3, %v617_v14, %v615_v15 }
 0x191   : > { %v619_v17 = vadd.f32 1e-06, %v618_v16 }
 0x193   : > { %3391 = vrcp.f32 %v619_v17 }
 0x1a0   : > { %v3392_v20 = vpop.eup %3391 }
 0x1a1   : > { %v621_v22 = vmul.f32 %v3392_v20, %v611_v19 }
 0x1a3   : > { %v3818_v23 = vadd.f32 %v2983_v21, %v621_v22 }
 0x1a5   : > { %3156 = vmatmul.mubr.msk.f32.vlgmr.msra.gmra.mxu1 %vm592_vm0, %v3818_v23  ;;  %3216 = vmatmul.mubr.msk.f32.vlgmr.msra.gmra.mxu0 %vm592_vm0, %v3818_v23 }
 0x1a6   : > { %3159 = vmatpush3.xpose.msk.msra.mxu1 %vm592_vm0, %v713_v24  ;;  %3224 = vmatpush3.xpose.msk.msra.mxu0 %vm592_vm0, %v3027_v25  ;;  %v3014_v25 = vld [vmem:[%s4194_s9 + $0x8] sm:$0xff] }
 0x1a7   : > { %3160 = vmatprep.mubr.msk.f32.mxu1 %vm3571_vm1, %v3570_v7  ;;  %3225 = vmatprep.mubr.msk.f32.mxu0 %vm3571_vm1, %v3570_v7 }
 0x1a8   : > { %3163 = vmatprep.subr.mxu1 %v3570_v7  ;;  %3233 = vmatprep.subr.mxu0 %v3570_v7 }
 0x1a9   : > { %3161 = vmatmul.mubr.msk.f32.vlgmr.msra.gmra.mxu1 %vm592_vm0, %v3818_v23  ;;  %3226 = vmatmul.mubr.msk.f32.vlgmr.msra.gmra.mxu0 %vm592_vm0, %v3818_v23 }
 0x1aa   : > { %3164 = vmatpush3.xpose.msk.msra.mxu1 %vm592_vm0, %v794_v26  ;;  %3165 = vmatprep.mubr.msk.f32.mxu1 %vm3571_vm1, %v3570_v7  ;;  %v1037_v26 = vld [vmem:[%s4194_s9] sm:$0xff] }
 0x1ab   : > { %3168 = vmatprep.subr.mxu1 %v3570_v7  ;;  %3235 = vmatprep.mubr.msk.f32.mxu0 %vm3571_vm1, %v3570_v7 }
 0x1ad   : > { %3166 = vmatmul.mubr.msk.f32.vlgmr.msra.gmra.mxu1 %vm592_vm0, %v3818_v23 }
 0x1ae   : > { %3170 = vmatprep.mubr.msk.f32.mxu1 %vm3571_vm1, %v3570_v7 }
 0x265   : > { %v709_v27 = vpop.f32.mrf.mxu1  ;;  %v3855_v28 = vpop.f32.mrf.mxu0 }
 0x266   : > { %v710_v41 = vadd.f32 %v2984_v35, %v709_v27 }
 0x267   : > { %v3157_v29 = vpop.f32.mrf.mxu1  ;;  %v3217_v30 = vpop.f32.mrf.mxu0 }
 0x268   : > { %v3022_v30 = vld [vmem:[%s4190_s5 + $0x10] sm:$0xff] }
 0x269   : > { %v790_v33 = vpop.f32.mrf.mxu1  ;;  %v1841_v34 = vpop.f32.mrf.mxu0 }
 0x26a   : > { %v791_v36 = vadd.f32 %v2987_v31, %v790_v33  ;;  %v1842_v37 = vadd.f32 %v3029_v32, %v1841_v34 }
 0x26b   : > { %v3162_v38 = vpop.f32.mrf.mxu1  ;;  %v3227_v39 = vpop.f32.mrf.mxu0 }
 0x26c   : > { %3169 = vmatpush3.xpose.msk.msra.mxu1 %vm875_vm4, %v791_v36  ;;  %3234 = vmatpush3.msra.mxu0 %v1842_v37  ;;  %v3024_v36 = vld [vmem:[%s4191_s6 + $0x2] ss:$0 sm:$0xff] }
 0x26d   : > { %v871_v42 = vpop.f32.mrf.mxu1  ;;  %3173 = vmatprep.subr.mxu1 %v3570_v7  ;;  %3243 = vmatprep.subr.mxu0 %v3570_v7  ;;  %v3019_v38 = vld [vmem:[%s4189_s4 + $0x2] ss:$0 sm:$0xff] }
 0x26e   : > { %v872_v43 = vadd.f32 %v2990_v40, %v871_v42 }
 0x26f   : > { %v3167_v44 = vpop.f32.mrf.mxu1  ;;  %3171 = vmatmul.mubr.msk.f32.vlgmr.msra.gmra.mxu1 %vm875_vm4, %v710_v41  ;;  %v1676_v41 = vadd.f32 %v3019_v38, %v3855_v28  ;;  %v2624_v38 = vld [vmem:[%s4198_s13 + $0x58] sm:$0xff] }
 0x270   : > { %3174 = vmatpush3.msra.mxu1 %v872_v43  ;;  %3175 = vmatprep.mubr.msk.f32.mxu1 %vm3571_vm1, %v3570_v7 }
 0x271   : > { %3178 = vmatprep.subr.mxu1 %v3570_v7 }
 0x32f   : > { %v948_v45 = vpop.f32.mrf.mxu1 }
 0x330   : > { %v952_v46 = vmul.f32 0.35355338, %v948_v45 }
 0x331   : > { %v3172_v47 = vpop.f32.mrf.mxu1 }
 0x332   : > { %v953_v48 = vsel %vm875_vm4, %v952_v46, -inf }
 0x333   : > { %954 = vmax.xlane.f32.xlu1 %v953_v48 }
 0x3bc   : > { %v955_v49 = vpop.xlane.xlu1 %954 }
 0x3bd   : > { %v956_v50 = vsub.f32 %v952_v46, %v955_v49 }
 0x3bf   : > { %v957_v51 = vmul.f32 1.442695, %v956_v50  ;;  %v3035_v50 = vld [vmem:[%s4194_s9 + $0x10] sm:$0xff] }
 0x3c1   : > { %3393 = vpow2.f32 %v957_v51 }
 0x3ce   : > { %v3394_v52 = vpop.eup %3393 }
 0x3cf   : > { %v959_v53 = vsel %vm875_vm4, %v3394_v52, 0.0 }
 0x3d0   : > { %960 = vadd.xlane.f32.xlu1 %v959_v53 }
 0x459   : > { %v961_v54 = vpop.xlane.xlu1 %960 }
 0x45a   : > { %3395 = vrcp.f32 %v961_v54  ;;  %v3037_v54 = vld [vmem:[%s4188_s3 + $0x18] sm:$0xff] }
 0x467   : > { %v3396_v55 = vpop.eup %3395 }
 0x468   : > { %v963_v56 = vmul.f32 %v3396_v55, %v3394_v52  ;;  %v3047_v55 = vld [vmem:[%s4192_s7 + $0x18] sm:$0xff] }
 0x46a   : > { %3176 = vmatmul.mubr.msk.f32.vlgmr.msra.gmra.mxu1 %vm875_vm4, %v963_v56  ;;  %v3042_v56 = vld [vmem:[%s4190_s5 + $0x18] sm:$0xff] }
 0x46b   : > { %3179 = vmatpush3.xpose.msk.msra.mxu1 %vm592_vm0, %v2996_v57  ;;  %3180 = vmatprep.mubr.msk.f32.mxu1 %vm3571_vm1, %v3570_v7 }
 0x46c   : > { %3183 = vmatprep.subr.mxu1 %v3570_v7 }
 0x46e   : > { %3181 = vmatmul.mubr.msk.f32.vlgmr.msra.gmra.mxu1 %vm592_vm0, %v3818_v23 }
 0x46f   : > { %3184 = vmatpush3.xpose.msk.msra.mxu1 %vm592_vm0, %v3001_v58  ;;  %3185 = vmatprep.mubr.msk.f32.mxu1 %vm3571_vm1, %v3570_v7 }
 0x470   : > { %3188 = vmatprep.subr.mxu1 %v3570_v7 }
 0x472   : > { %3186 = vmatmul.mubr.msk.f32.vlgmr.msra.gmra.mxu1 %vm592_vm0, %v3818_v23 }
 0x473   : > { %3189 = vmatpush3.xpose.msk.msra.mxu1 %vm592_vm0, %v3006_v59  ;;  %3190 = vmatprep.mubr.msk.f32.mxu1 %vm3571_vm1, %v3570_v7 }
 0x474   : > { %3193 = vmatprep.subr.mxu1 %v3570_v7 }
 0x476   : > { %3191 = vmatmul.mubr.msk.f32.vlgmr.msra.gmra.mxu1 %vm592_vm0, %v3818_v23 }
 0x477   : > { %3195 = vmatprep.mubr.msk.f32.mxu1 %vm3571_vm1, %v3570_v7 }
 0x52a   : > { %v1033_v60 = vpop.f32.mrf.mxu1 }
 0x52c   : > { %v3177_v61 = vpop.f32.mrf.mxu1 }
 0x52d   : > { %v3049_v61 = vld [vmem:[%s4193_s8 + $0x3] ss:$0 sm:$0xff] }
 0x52e   : > { %v1117_v62 = vpop.f32.mrf.mxu1 }
 0x52f   : > { %v1118_v8 = vadd.f32 %v2998_v3, %v1117_v62 }
 0x530   : > { %v3182_v63 = vpop.f32.mrf.mxu1 }
 0x532   : > { %v1200_v2 = vpop.f32.mrf.mxu1 }
 0x533   : > { %v1201_v4 = vadd.f32 %v3003_v1, %v1200_v2 }
 0x534   : > { %v3187_v5 = vpop.f32.mrf.mxu1 }
 0x535   : > { %3194 = vmatpush3.xpose.msk.msra.mxu1 %vm875_vm4, %v1201_v4 }
 0x536   : > { %v1283_v9 = vpop.f32.mrf.mxu1  ;;  %3198 = vmatprep.subr.mxu1 %v3570_v7 }
 0x537   : > { %v1284_v10 = vadd.f32 %v3008_v6, %v1283_v9  ;;  %v3039_v6 = vld [vmem:[%s4189_s4 + $0x3] ss:$0 sm:$0xff] }
 0x538   : > { %v3192_v11 = vpop.f32.mrf.mxu1  ;;  %3196 = vmatmul.mubr.msk.f32.vlgmr.msra.gmra.mxu1 %vm875_vm4, %v1118_v8 }
 0x539   : > { %3199 = vmatpush3.msra.mxu1 %v1284_v10  ;;  %3200 = vmatprep.mubr.msk.f32.mxu1 %vm3571_vm1, %v3570_v7 }
 0x53a   : > { %3203 = vmatprep.subr.mxu1 %v3570_v7 }
 0x5f8   : > { %v1359_v12 = vpop.f32.mrf.mxu1 }
 0x5f9   : > { %v1363_v13 = vmul.f32 0.35355338, %v1359_v12 }
 0x5fa   : > { %v3197_v14 = vpop.f32.mrf.mxu1 }
 0x5fb   : > { %v1364_v15 = vsel %vm875_vm4, %v1363_v13, -inf }
 0x5fc   : > { %1365 = vmax.xlane.f32.xlu0 %v1364_v15 }
 0x685   : > { %v1366_v16 = vpop.xlane.xlu0 %1365 }
 0x686   : > { %v1367_v17 = vsub.f32 %v1363_v13, %v1366_v16 }
 0x688   : > { %v1368_v18 = vmul.f32 1.442695, %v1367_v17 }
 0x68a   : > { %3397 = vpow2.f32 %v1368_v18 }
 0x697   : > { %v3398_v19 = vpop.eup %3397 }
 0x698   : > { %v1370_v20 = vsel %vm875_vm4, %v3398_v19, 0.0 }
 0x699   : > { %1371 = vadd.xlane.f32.xlu1 %v1370_v20  ;;  %v3055_v20 = vld [vmem:[%s4194_s9 + $0x18] sm:$0xff] }
 0x722   : > { %v1372_v21 = vpop.xlane.xlu1 %1371 }
 0x723   : > { %3399 = vrcp.f32 %v1372_v21 }
 0x730   : > { %v3400_v22 = vpop.eup %3399 }
 0x731   : > { %v1374_v24 = vmul.f32 %v3400_v22, %v3398_v19 }
 0x733   : > { %3201 = vmatmul.mubr.msk.f32.vlgmr.msra.gmra.mxu1 %vm875_vm4, %v1374_v24 }
 0x734   : > { %3204 = vmatpush3.msra.mxu1 %v3014_v25  ;;  %3205 = vmatprep.mubr.msk.f32.mxu1 %vm3571_vm1, %v3570_v7 }
 0x735   : > { %3208 = vmatprep.subr.mxu1 %v3570_v7 }
 0x7f3   : > { %v1444_v27 = vpop.f32.mrf.mxu1 }
 0x7f4   : > { %3206 = vmatmul.mubr.msk.f32.vlgmr.msra.gmra.mxu1 %vm875_vm4, %v1444_v27 }
 0x7f5   : > { %v3202_v29 = vpop.f32.mrf.mxu1  ;;  %3209 = vmatpush3.msra.mxu1 %v1037_v26  ;;  %3210 = vmatprep.mubr.msk.f32.mxu1 %vm3571_vm1, %v3570_v7 }
 0x7f6   : > { %3218 = vmatprep.subr.mxu1 %v3570_v7 }
 0x7f8   : > { %3211 = vmatmul.mubr.msk.f32.vlgmr.msra.gmra.mxu1 %vm875_vm4, %v1033_v60 }
 0x7f9   : > { %3219 = vmatpush3.xpose.msk.msra.mxu1 %vm592_vm0, %v3022_v30  ;;  %3220 = vmatprep.mubr.msk.f32.mxu1 %vm3571_vm1, %v3570_v7  ;;  %v3057_v30 = vld [vmem:[%s4195_s10] ss:$0 sm:$0xff] }
 0x7fa   : > { %3228 = vmatprep.subr.mxu1 %v3570_v7 }
 0x7fc   : > { %3221 = vmatmul.mubr.msk.f32.vlgmr.msra.gmra.mxu1 %vm592_vm0, %v3818_v23 }
 0x7fd   : > { %3230 = vmatprep.mubr.msk.f32.mxu1 %vm3571_vm1, %v3570_v7 }
 0x8b4   : > { %v1519_v31 = vpop.f32.mrf.mxu1 }
 0x8b6   : > { %v3207_v32 = vpop.f32.mrf.mxu1 }
 0x8b8   : > { %v1592_v33 = vpop.f32.mrf.mxu1 }
 0x8b9   : > { %v1593_v34 = vadd.f32 %v1592_v33, %v1519_v31 }
 0x8ba   : > { %v3212_v35 = vpop.f32.mrf.mxu1 }
 0x8bb   : > { %v2628_v35 = vld [vmem:[%s4198_s13 + $0x78] sm:$0xff] }
 0x8bc   : > { %v1758_v37 = vpop.f32.mrf.mxu1 }
 0x8bd   : > { %v1759_v39 = vadd.f32 %v3024_v36, %v1758_v37  ;;  %v2627_v36 = vld [vmem:[%s4198_s13 + $0x70] sm:$0xff]  ;;  %v2625_v37 = vld [vmem:[%s4198_s13 + $0x60] sm:$0xff] }
 0x8be   : > { %v3222_v40 = vpop.f32.mrf.mxu1 }
 0x8bf   : > { %3229 = vmatpush3.xpose.msk.msra.mxu1 %vm875_vm4, %v1759_v39  ;;  %v2623_v39 = vld [vmem:[%s4198_s13 + $0x50] sm:$0xff] }
 0x8c0   : > { %3238 = vmatprep.subr.mxu1 %v3570_v7 }
 0x8c2   : > { %3231 = vmatmul.mubr.msk.f32.vlgmr.msra.gmra.mxu1 %vm875_vm4, %v1676_v41 }
 0x8c3   : > { %3240 = vmatprep.mubr.msk.f32.mxu1 %vm3571_vm1, %v3570_v7  ;;  %3239 = vmatpush3.msra.mxu1 %v3035_v50  ;;  %v2616_v50 = vld [vmem:[%s4198_s13 + $0x18] sm:$0xff] }
 0x8c4   : > { %3248 = vmatprep.subr.mxu1 %v3570_v7 }
 0x982   : > { %v1917_v42 = vpop.f32.mrf.mxu1 }
 0x983   : > { %v1921_v43 = vmul.f32 0.35355338, %v1917_v42 }
 0x984   : > { %v3232_v44 = vpop.f32.mrf.mxu1 }
 0x985   : > { %v1922_v45 = vsel %vm875_vm4, %v1921_v43, -inf }
 0x986   : > { %1923 = vmax.xlane.f32.xlu0 %v1922_v45  ;;  %v2622_v45 = vld [vmem:[%s4198_s13 + $0x48] sm:$0xff] }
 0xa0f   : > { %v1924_v46 = vpop.xlane.xlu0 %1923 }
 0xa10   : > { %v1925_v47 = vsub.f32 %v1921_v43, %v1924_v46  ;;  %v2621_v46 = vld [vmem:[%s4198_s13 + $0x40] sm:$0xff] }
 0xa12   : > { %v1926_v48 = vmul.f32 1.442695, %v1925_v47  ;;  %v2620_v47 = vld [vmem:[%s4198_s13 + $0x38] sm:$0xff] }
 0xa14   : > { %3401 = vpow2.f32 %v1926_v48  ;;  %v2619_v48 = vld [vmem:[%s4198_s13 + $0x30] sm:$0xff] }
 0xa21   : > { %v3402_v49 = vpop.eup %3401 }
 0xa22   : > { %v1928_v28 = vsel %vm875_vm4, %v3402_v49, 0.0 }
 0xa23   : > { %1929 = vadd.xlane.f32.xlu1 %v1928_v28  ;;  %v2617_v28 = vld [vmem:[%s4198_s13 + $0x20] sm:$0xff] }
 0xaac   : > { %v1930_v51 = vpop.xlane.xlu1 %1929 }
 0xaad   : > { %3403 = vrcp.f32 %v1930_v51  ;;  %v2615_v51 = vld [vmem:[%s4198_s13 + $0x10] sm:$0xff] }
 0xaba   : > { %v3404_v52 = vpop.eup %3403 }
 0xabb   : > { %v1932_v53 = vmul.f32 %v3404_v52, %v3402_v49  ;;  %v2618_v49 = vld [vmem:[%s4198_s13 + $0x28] sm:$0xff] }
 0xabc   : > { %v2614_v52 = vld [vmem:[%s4198_s13 + $0x8] sm:$0xff] }
 0xabd   : > { %3236 = vmatmul.mubr.msk.f32.vlgmr.msra.gmra.mxu0 %vm875_vm4, %v1932_v53  ;;  %v2613_v53 = vld [vmem:[%s4198_s13] sm:$0xff] }
 0xabe   : > { %3244 = vmatpush3.xpose.msk.msra.mxu0 %vm592_vm0, %v3037_v54  ;;  %3245 = vmatprep.mubr.msk.f32.mxu0 %vm3571_vm1, %v3570_v7 }
 0xabf   : > { %3253 = vmatprep.subr.mxu0 %v3570_v7 }
 0xac1   : > { %3246 = vmatmul.mubr.msk.f32.vlgmr.msra.gmra.mxu0 %vm592_vm0, %v3818_v23 }
 0xac2   : > { %3254 = vmatpush3.xpose.msk.msra.mxu0 %vm592_vm0, %v3047_v55  ;;  %3255 = vmatprep.mubr.msk.f32.mxu0 %vm3571_vm1, %v3570_v7 }
 0xac3   : > { %3263 = vmatprep.subr.mxu0 %v3570_v7 }
 0xac5   : > { %3256 = vmatmul.mubr.msk.f32.vlgmr.msra.gmra.mxu0 %vm592_vm0, %v3818_v23 }
 0xac6   : > { %3265 = vmatprep.mubr.msk.f32.mxu0 %vm3571_vm1, %v3570_v7 }
 0xb7d   : > { %v2002_v57 = vpop.f32.mrf.mxu0 }
 0xb7e   : > { %3241 = vmatmul.mubr.msk.f32.vlgmr.msra.gmra.mxu1 %vm875_vm4, %v2002_v57 }
 0xb7f   : > { %v3237_v58 = vpop.f32.mrf.mxu0  ;;  %3249 = vmatpush3.xpose.msk.msra.mxu1 %vm592_vm0, %v3042_v56  ;;  %3250 = vmatprep.mubr.msk.f32.mxu1 %vm3571_vm1, %v3570_v7 }
 0xb80   : > { %3258 = vmatprep.subr.mxu1 %v3570_v7 }
 0xb81   : > { %v2161_v59 = vpop.f32.mrf.mxu0 }
 0xb82   : > { %3251 = vmatmul.mubr.msk.f32.vlgmr.msra.gmra.mxu1 %vm592_vm0, %v3818_v23  ;;  %v3044_v23 = vld [vmem:[%s4191_s6 + $0x3] ss:$0 sm:$0xff]  ;;  %v2162_v10 = vadd.f32 %v3039_v6, %v2161_v59  ;;  %v2785_v6 = vld [vmem:[%s4200_s15 + $0x8] sm:$0xff] }
 0xb83   : > { %v3247_v60 = vpop.f32.mrf.mxu0  ;;  %3260 = vmatprep.mubr.msk.f32.mxu1 %vm3571_vm1, %v3570_v7 }
 0xb85   : > { %v2327_v62 = vpop.f32.mrf.mxu0 }
 0xb86   : > { %v2328_v63 = vadd.f32 %v3049_v61, %v2327_v62  ;;  %v3058_v62 = vld [vmem:[%s4196_s11] ss:$0 sm:$0xff] }
 0xb87   : > { %v3257_v1 = vpop.f32.mrf.mxu0 }
 0xb88   : > { %3264 = vmatpush3.msra.mxu0 %v2328_v63 }
 0xb89   : > { %3273 = vmatprep.subr.mxu0 %v3570_v7 }
 0xc3e   : > { %v2077_v2 = vpop.f32.mrf.mxu1 }
 0xc3f   : > { %v2081_v3 = vadd.f32 %v2077_v2, %v1593_v34  ;;  %v3059_v2 = vld [vmem:[%s4197_s12] ss:$0 sm:$0xff] }
 0xc40   : > { %v3242_v4 = vpop.f32.mrf.mxu1 }
 0xc42   : > { %v2244_v5 = vpop.f32.mrf.mxu1 }
 0xc43   : > { %v2245_v8 = vadd.f32 %v3044_v23, %v2244_v5  ;;  %v2787_v23 = vld [vmem:[%s4200_s15 + $0x18] sm:$0xff]  ;;  %v2786_v5 = vld [vmem:[%s4200_s15 + $0x10] sm:$0xff] }
 0xc44   : > { %v3252_v9 = vpop.f32.mrf.mxu1 }
 0xc45   : > { %3259 = vmatpush3.xpose.msk.msra.mxu1 %vm875_vm4, %v2245_v8  ;;  %v2784_v8 = vld [vmem:[%s4200_s15] sm:$0xff] }
 0xc46   : > { %3268 = vmatprep.subr.mxu1 %v3570_v7  ;;  %v3060_v9 = vld [vmem:[%s4244_s22] ss:$0 sm:$0xff]  ;;  %s3503_s22 = scalar_lea.vmem %s3502_s27, 256 }
 0xc47   : > { %p3505_p6 = scmp.lt.s32.totalorder %s3503_s22, %s3497_s16 }
 0xc48   : > { %3261 = vmatmul.mubr.msk.f32.vlgmr.msra.gmra.mxu1 %vm875_vm4, %v2162_v10 }
 0xc49   : > { %3270 = vmatprep.mubr.msk.f32.mxu1 %vm3571_vm1, %v3570_v7  ;;  %3269 = vmatpush3.msra.mxu1 %v3055_v20  ;;  %p3506_p9 = por %p3505_p6, %p3504_p4 }
 0xc4a   : > { %3308 = vmatprep.subr.mxu1 %v3570_v7 }
 0xc4b   : > { %p3507_p3 = pnand %p3506_p9, %p3500_p2 }
 0xd08   : > { %v2403_v11 = vpop.f32.mrf.mxu1 }
 0xd09   : > { %v2407_v12 = vmul.f32 0.35355338, %v2403_v11 }
 0xd0a   : > { %v3262_v13 = vpop.f32.mrf.mxu1 }
 0xd0b   : > { %v2408_v14 = vsel %vm875_vm4, %v2407_v12, -inf }
 0xd0c   : > { %2409 = vmax.xlane.f32.xlu0 %v2408_v14 }
 0xd95   : > { %v2410_v15 = vpop.xlane.xlu0 %2409 }
 0xd96   : > { %v2411_v16 = vsub.f32 %v2407_v12, %v2410_v15 }
 0xd98   : > { %v2412_v17 = vmul.f32 1.442695, %v2411_v16 }
 0xd9a   : > { %3405 = vpow2.f32 %v2412_v17 }
 0xda7   : > { %v3406_v18 = vpop.eup %3405 }
 0xda8   : > { %v2414_v19 = vsel %vm875_vm4, %v3406_v18, 0.0 }
 0xda9   : > { %2415 = vadd.xlane.f32.xlu1 %v2414_v19 }
 0xe32   : > { %v2416_v21 = vpop.xlane.xlu1 %2415 }
 0xe33   : > { %3407 = vrcp.f32 %v2416_v21 }
 0xe40   : > { %v3408_v22 = vpop.eup %3407 }
 0xe41   : > { %v2418_v24 = vmul.f32 %v3408_v22, %v3406_v18 }
 0xe43   : > { %3266 = vmatmul.mubr.msk.f32.vlgmr.msra.gmra.mxu0 %vm875_vm4, %v2418_v24 }
 0xe44   : > { %3305 = vmatprep.mubr.msk.f32.mxu0 %vm3571_vm1, %v3570_v7  ;;  %3274 = vmatpush3.xpose.msk.msra.mxu0 %vm592_vm0, %v2628_v35  ;;  %v3572_v35 = vmov -1.0  }
 0xe45   : > { %3275 = vmatprep.subr.mxu0 %v3570_v7 }
 0xe48   : > { %3276 = vmatpush3.xpose.msk.msra.mxu0 %vm592_vm0, %v2627_v36 }
 0xe49   : > { %3277 = vmatprep.subr.mxu0 %v3570_v7 }
 0xf03   : > { %v2488_v25 = vpop.f32.mrf.mxu0 }
 0xf04   : > { %3271 = vmatmul.mubr.msk.f32.vlgmr.msra.gmra.mxu1 %vm875_vm4, %v2488_v25 }
 0xf05   : > { %v3267_v26 = vpop.f32.mrf.mxu0  ;;  %3316 = vmatprep.mubr.msk.f32.mxu1 %vm3571_vm1, %v3570_v7  ;;  %3309 = vmatpush3.xpose.msra.mxu1 %v2787_v23 }
 0xf06   : > { %3310 = vmatprep.subr.mxu1 %v3570_v7 }
 0xf09   : > { %3311 = vmatpush3.xpose.msra.mxu1 %v2786_v5 }
 0xf0a   : > { %3312 = vmatprep.subr.mxu1 %v3570_v7 }
 0xf0d   : > { %3313 = vmatpush3.xpose.msra.mxu1 %v2785_v6 }
 0xf0e   : > { %3314 = vmatprep.subr.mxu1 %v3570_v7 }
 0xf11   : > { %3315 = vmatpush3.xpose.msra.mxu1 %v2784_v8 }
 0xfc4   : > { %v2563_v27 = vpop.f32.mrf.mxu1 }
 0xfc5   : > { %v2567_v29 = vadd.f32 %v2563_v27, %v2081_v3 }
 0xfc6   : > { %v3272_v31 = vpop.f32.mrf.mxu1 }
 0xfc7   : > { %v2568_v32 = vadd.f32 %v2567_v29, %v3796_v0  ;;  %v2626_v0 = vld [vmem:[%s4198_s13 + $0x68] sm:$0xff] }
 0xfc8   : > { %3278 = vmatpush3.xpose.msk.msra.mxu0 %vm592_vm0, %v2626_v0 }
 0xfc9   : > { %v4033_v33 = vadd.f32 %v3057_v30, %v2568_v32  ;;  %3279 = vmatprep.subr.mxu0 %v3570_v7 }
 0xfcb   : > { %v2579_v34 = vsel %vm592_vm0, %v4033_v33, 0.0 }
 0xfcc   : > { %2580 = vadd.xlane.f32.xlu0 %v2579_v34  ;;  %3280 = vmatpush3.xpose.msk.msra.mxu0 %vm592_vm0, %v2625_v37 }
 0xfcd   : > { %3281 = vmatprep.subr.mxu0 %v3570_v7 }
 0xfd0   : > { %3282 = vmatpush3.xpose.msk.msra.mxu0 %vm592_vm0, %v2624_v38 }
 0xfd1   : > { %3283 = vmatprep.subr.mxu0 %v3570_v7 }
 0xfd4   : > { %3284 = vmatpush3.xpose.msk.msra.mxu0 %vm592_vm0, %v2623_v39 }
 0xfd5   : > { %3285 = vmatprep.subr.mxu0 %v3570_v7 }
 0xfd8   : > { %3286 = vmatpush3.xpose.msk.msra.mxu0 %vm592_vm0, %v2622_v45 }
 0xfd9   : > { %3287 = vmatprep.subr.mxu0 %v3570_v7 }
 0xfdc   : > { %3288 = vmatpush3.xpose.msk.msra.mxu0 %vm592_vm0, %v2621_v46 }
 0xfdd   : > { %3289 = vmatprep.subr.mxu0 %v3570_v7 }
 0xfe0   : > { %3290 = vmatpush3.xpose.msk.msra.mxu0 %vm592_vm0, %v2620_v47 }
 0xfe1   : > { %3291 = vmatprep.subr.mxu0 %v3570_v7 }
 0xfe4   : > { %3292 = vmatpush3.xpose.msk.msra.mxu0 %vm592_vm0, %v2619_v48 }
 0xfe5   : > { %3293 = vmatprep.subr.mxu0 %v3570_v7 }
 0xfe8   : > { %3294 = vmatpush3.xpose.msk.msra.mxu0 %vm592_vm0, %v2618_v49 }
 0xfe9   : > { %3295 = vmatprep.subr.mxu0 %v3570_v7 }
 0xfec   : > { %3296 = vmatpush3.xpose.msk.msra.mxu0 %vm592_vm0, %v2617_v28 }
 0xfed   : > { %3297 = vmatprep.subr.mxu0 %v3570_v7 }
 0xff0   : > { %3298 = vmatpush3.xpose.msk.msra.mxu0 %vm592_vm0, %v2616_v50 }
 0xff1   : > { %3299 = vmatprep.subr.mxu0 %v3570_v7 }
 0xff4   : > { %3300 = vmatpush3.xpose.msk.msra.mxu0 %vm592_vm0, %v2615_v51 }
 0xff5   : > { %3301 = vmatprep.subr.mxu0 %v3570_v7 }
 0xff8   : > { %3302 = vmatpush3.xpose.msk.msra.mxu0 %vm592_vm0, %v2614_v52 }
 0xff9   : > { %3303 = vmatprep.subr.mxu0 %v3570_v7 }
 0xffc   : > { %3304 = vmatpush3.xpose.msk.msra.mxu0 %vm592_vm0, %v2613_v53 }
0x1055   : > { %v2581_v40 = vpop.xlane.xlu0 %2580 }
0x1056   : > { %v2582_v41 = vmul.f32 0.03125, %v2581_v40  ;;  %v3078_v40 = vld [vmem:[%s4246_s29] ss:$0 sm:$0xff] }
0x1058   : > { %v2583_v42 = vsub.f32 %v4033_v33, %v2582_v41 }
0x105a   : > { %v2584_v43 = vmul.f32 %v2583_v42, %v2583_v42  ;;  %v2595_v63 = vmul.f32 %v3058_v62, %v2583_v42 }
0x105c   : > { %v2585_v44 = vsel %vm592_vm0, %v2584_v43, 0.0 }
0x105d   : > { %2586 = vadd.xlane.f32.xlu1 %v2585_v44 }
0x10e6   : > { %v2587_v54 = vpop.xlane.xlu1 %2586 }
0x10e7   : > { %v2588_v55 = vmul.f32 0.032258064, %v2587_v54 }
0x10e9   : > { %3409 = vrsqrt.f32 %v2588_v55  ;;  %vm2598_vm5 = vcmp.eq.f32.partialorder %v2588_v55, inf  ;;  %v2601_v58 = vand.u32 2147483648, %v2588_v55  ;;  %vm2600_vm6 = vcmp.eq.f32.partialorder %v2588_v55, 0.0 }
0x10f6   : > { %v3410_v56 = vpop.eup %3409 }
0x10f7   : > { %v2597_v57 = vmul.f32 %v3410_v56, %v2588_v55 }
0x10f9   : > { %v2599_v59 = vsel %vm2598_vm5, %v2588_v55, %v2597_v57 }
0x10fa   : > { %v2602_v60 = vsel %vm2600_vm6, %v2601_v58, %v2599_v59 }
0x10fb   : > { %v2603_v61 = vadd.f32 1e-06, %v2602_v60 }
0x10fd   : > { %3411 = vrcp.f32 %v2603_v61 }
0x110a   : > { %v3412_v1 = vpop.eup %3411 }
0x110b   : > { %v2605_v3 = vmul.f32 %v3412_v1, %v2595_v63 }
0x110d   : > { %v2612_v4 = vadd.f32 %v3059_v2, %v2605_v3 }
0x110f   : > { %3306 = vmatmul.mubr.msk.f32.vlgmr.msra.gmra.mxu0 %vm592_vm0, %v2612_v4 }
0x11cf   : > { %v2753_v10 = vpop.f32.mrf.mxu0 }
0x11d0   : > { %v2754_v11 = vadd.f32 %v3060_v9, %v2753_v10 }
0x11d1   : > { %v3307_v12 = vpop.f32.mrf.mxu0 }
0x11d2   : > { %v2758_v13 = vmul.f32 0.70710677, %v2754_v11  ;;  %v2757_v37 = vmul.f32 0.5, %v2754_v11 }
0x11d4   : > { %v2761_v14 = vand.u32 2147483647, %v2758_v13  ;;  %vm2759_vm7 = vcmp.ge.f32.partialorder %v2758_v13, 0.0 }
0x11d5   : > { %v2760_v36 = vsel %vm2759_vm7, 1.0, %v3572_v35 }
0x11d6   : > { %v2762_v15 = vmul.f32 0.3275911, %v2761_v14  ;;  %v2775_v17 = vsub.f32 0.0, %v2761_v14 }
0x11d8   : > { %v2763_v16 = vadd.f32 1.0, %v2762_v15  ;;  %v2776_v18 = vmul.f32 %v2775_v17, %v2761_v14 }
0x11da   : > { %3413 = vrcp.f32 %v2763_v16  ;;  %v2777_v20 = vmul.f32 1.442695, %v2776_v18 }
0x11dc   : > { %3415 = vpow2.f32 %v2777_v20 }
0x11e7   : > { %v3414_v7 = vpop.eup %3413 }
0x11e8   : > { %v2766_v19 = vmul.f32 1.0614054, %v3414_v7 }
0x11e9   : > { %v3416_v31 = vpop.eup %3415 }
0x11ea   : > { %v2767_v21 = vadd.f32 -1.4531521, %v2766_v19 }
0x11ec   : > { %v2768_v22 = vmul.f32 %v3414_v7, %v2767_v21 }
0x11ee   : > { %v2769_v24 = vadd.f32 1.4214138, %v2768_v22 }
0x11f0   : > { %v2770_v25 = vmul.f32 %v3414_v7, %v2769_v24 }
0x11f2   : > { %v2771_v26 = vadd.f32 -0.28449672, %v2770_v25 }
0x11f4   : > { %v2772_v27 = vmul.f32 %v3414_v7, %v2771_v26 }
0x11f6   : > { %v2773_v29 = vadd.f32 0.2548296, %v2772_v27 }
0x11f8   : > { %v2774_v30 = vmul.f32 %v3414_v7, %v2773_v29 }
0x11fa   : > { %v2779_v32 = vmul.f32 %v3416_v31, %v2774_v30 }
0x11fc   : > { %v2780_v34 = vsub.f32 1.0, %v2779_v32 }
0x11fe   : > { %v2781_v0 = vmul.f32 %v2780_v34, %v2760_v36 }
0x1200   : > { %v2782_v38 = vadd.f32 1.0, %v2781_v0 }
0x1202   : > { %v2783_v39 = vmul.f32 %v2782_v38, %v2757_v37 }
0x1204   : > { %3317 = vmatmul.mubr.f32.vlgmr.msra.gmra.mxu1 %v2783_v39 }
0x12c4   : > { %v2861_v41 = vpop.f32.mrf.mxu1 }
0x12c5   : > { %v2862_v42 = vadd.f32 %v3078_v40, %v2861_v41 }
0x12c6   : > { %v3318_v43 = vpop.f32.mrf.mxu1 }
0x12c7   : > { %v2865_v44 = vadd.f32 %v2862_v42, %v4033_v33 }
0x12c9   : > { %2866 = vst.msk [vmem:[%s588_s24] sm:$0xff] %vm592_vm0, %v2865_v44 }
0x12ca   : > { %3510 = shalt.err (!%p3507_p3)
}
0x12cb   : > { %s3511_s19 = scalar_lea.hbm %s2879_s17, 128  ;;  %s3515_s29 = scalar_lea.hbm %s4247_s18, 256 }
0x12cc   : > { %p3512_p7 = scmp.ne.s32.totalorder %s2879_s17, %s3511_s19  ;;  %p3516_p12 = scmp.lt.s32.totalorder %s2879_s17, %s4247_s18 }
0x12cd   : > { %p3517_p8 = scmp.lt.s32.totalorder %s3515_s29, %s3511_s19 }
0x12ce   : > { %p3513_p13 = pnand %p3512_p7, %p4248_p5 }
0x12cf   : > { %p3518_p11 = por %p3517_p8, %p3516_p12 }
0x12d0   : > { %p3514_p0 = pneg %p3513_p13 }
0x12d2   : > { %p3519_p10 = pnand %p3518_p11, %p3514_p0 }
0x12d4   : > { %3522 = shalt.err (!%p3519_p10)
}
0x12d5   : > { %3329 = dma.vmem_to_hbm [thread:$0]  (%p4248_p5), %s2882_s14, 128, %s2879_s17, %s2868_s21  }
0x12d6 PF: > { %s4249_s2 = sld [smem:[#allocation12_spill]] }
0x12d7   : > { %s4250_s0 = sld [smem:[#allocation15_spill]] }
0x12d8   : > { %s4251_s16 = sld [smem:[#allocation14_spill]] }
0x12dc   : > { %s2893_s28 = sand.u32 1, %s4249_s2  }
0x12dd   : > { %p4252_p1 = scmp.ne.s32.totalorder %s4250_s0, 0  ;;  %s2894_s27 = scalar_lea.sflag [#allocation4], %s2893_s28 }
0x12de   : > { %p4253_p2 = scmp.ge.s32.totalorder %s4251_s16, 2 }
0x12e0   : > { %p3343_p4 = pnand %p4253_p2, %p4252_p1 }
0x12e2   : > { %p3344_p6 = pneg %p3343_p4 }
0x12e4   : > { %3548 = dma.done.wait (%p3344_p6), %s2894_s27, 128  }
0x12e5   : > { %3550 = vsyncadd (%p3344_p6), %s2894_s27, 4294967168  ;;  %s4254_s27 = sld [smem:[#allocation16_spill]]  ;;  %s4257_s24 = smov %s3557_s25 }
0x12e6   : > { %s4255_s22 = sld [smem:[#allocation13_spill]] }
0x12e7   : > { %s4256_s26 = sld [smem:[#allocation17_spill]] }
0x12eb   : > { %p31_p9 = scmp.ge.s32.totalorder %s4254_s27, 4  }
0x12ec   : > { %s4258_s25 = smov %s4255_s22 }
0x12ed   :  { %33 = sbr.rel (!%p31_p9) target bundleno = 13 (0xd), region = 162 }
0x12f2   :  { %2899 = vsyncpa [#allocation3], 1 }
0x12f3   :  { %2901 = vsyncpa [#allocation3 + $0x1], 1 }
0x12f4   :  { %2902 = vsyncpa [#allocation6], 1 }
0x12f5   :  { %2903 = vsyncpa [#allocation4], 1 }
0x12f6   :  { %2905 = vsyncpa [#allocation4 + $0x1], 1 }

</bundles_post_ra>
